<compile_context>
chip_gen: v6e
topology: v6e:2x2x1
jax: 0.10.0
libtpu: 0.0.40
codegen_flags: <defaults>
</compile_context>

<pallas_src>
import math
import functools
import numpy as np
import jax
import jax.numpy as jnp
from jax.experimental import pallas as pl
from jax.experimental.pallas import tpu as pltpu


# ---------------------------------------------------------------------------
# Pallas kernels
# ---------------------------------------------------------------------------

def _matmul_bias_kernel(x_ref, w_ref, b_ref, o_ref):
    o_ref[...] = (jnp.dot(x_ref[...], w_ref[...],
                          preferred_element_type=jnp.float32)
                  + b_ref[...]).astype(o_ref.dtype)


def matmul_bias(x, w_t, b, tm=256):
    """y = x @ w_t + b  (x:(M,K), w_t:(K,N), b:(N,)).

    M is tiled (parallel grid axis), N is padded up to a multiple of 128 so output
    stores are lane-dense; the pad is sliced off before returning.
    """
    M, K = x.shape
    N = w_t.shape[1]
    n_pad = max(128, ((N + 127) // 128) * 128)
    if n_pad != N:
        w_t = jnp.pad(w_t, ((0, 0), (0, n_pad - N)))
        b = jnp.pad(b, (0, n_pad - N))
    if M <= tm:
        m_pad, tm_eff = M, M                      # single full block (legal: full dim)
    else:
        tm_eff = tm
        m_pad = ((M + tm - 1) // tm) * tm
        if m_pad != M:
            x = jnp.pad(x, ((0, m_pad - M), (0, 0)))
    out = pl.pallas_call(
        _matmul_bias_kernel,
        out_shape=jax.ShapeDtypeStruct((m_pad, n_pad), jnp.float32),
        grid=(m_pad // tm_eff,),
        in_specs=[pl.BlockSpec((tm_eff, K), lambda i: (i, 0)),
                  pl.BlockSpec((K, n_pad), lambda i: (0, 0)),
                  pl.BlockSpec((1, n_pad), lambda i: (0, 0))],
        out_specs=pl.BlockSpec((tm_eff, n_pad), lambda i: (i, 0)),
        compiler_params=pltpu.CompilerParams(
            dimension_semantics=("parallel",),
            vmem_limit_bytes=32 * 1024 * 1024),
    )(x, w_t, b.reshape(1, n_pad))
    return out[:M, :N]


def _bidir_lstm_kernel(gx_ref, whh_ref, o_ref, h_scr, c_scr, *, H):
    """One (direction, time-chunk) grid step; loops over time inside the kernel.

    gx_ref:(t_chunk,B,4H) pre-computed x@W_ih^T + b_ih + b_hh (time-reversed for the
    backward direction in the wrapper); whh_ref:(H,4H); h/c carried in VMEM scratch.
    """
    @pl.when(pl.program_id(1) == 0)               # start of a direction's sequence
    def _():
        h_scr[...] = jnp.zeros_like(h_scr)
        c_scr[...] = jnp.zeros_like(c_scr)

    t_chunk = gx_ref.shape[0]
    whh = whh_ref[...]                            # (H, 4H), VMEM-resident

    @pl.loop(0, t_chunk)
    def _(t):
        gx_t = gx_ref[pl.ds(t, 1)][0]             # (B, 4H)
        gates = gx_t + jnp.dot(h_scr[...], whh,
                               preferred_element_type=jnp.float32)
        # PyTorch gate order: i, f, g, o
        i_g = jax.nn.sigmoid(gates[:, 0 * H:1 * H])
        f_g = jax.nn.sigmoid(gates[:, 1 * H:2 * H])
        g_g = jnp.tanh(gates[:, 2 * H:3 * H])
        o_g = jax.nn.sigmoid(gates[:, 3 * H:4 * H])
        c_new = f_g * c_scr[...] + i_g * g_g
        h_new = o_g * jnp.tanh(c_new)
        c_scr[...] = c_new
        h_scr[...] = h_new
        o_ref[pl.ds(t, 1)] = h_new[None].astype(o_ref.dtype)


def lstm_scan_bidir(gx_all, whh_stacked):
    """Both LSTM directions in one kernel.

    gx_all:(2, T, B, 4H) — direction 0 forward-time, direction 1 already time-reversed.
    whh_stacked:(2, H, 4H). Returns (2, T, B, H) hidden states (direction 1 still reversed).
    Grid = (direction [parallel], time-chunk [arbitrary, carries h/c in scratch]).
    """
    _, T, B, G = gx_all.shape
    H = whh_stacked.shape[1]
    # keep each gx chunk comfortably inside VMEM (double-buffered)
    t_chunk = max(1, min(T, (4 * 1024 * 1024) // max(1, B * G * 4)))
    n_chunks = -(-T // t_chunk)
    t_pad = n_chunks * t_chunk
    if t_pad != T:
        gx_all = jnp.pad(gx_all, ((0, 0), (0, t_pad - T), (0, 0), (0, 0)))

    out = pl.pallas_call(
        functools.partial(_bidir_lstm_kernel, H=H),
        out_shape=jax.ShapeDtypeStruct((2, t_pad, B, H), jnp.float32),
        grid=(2, n_chunks),
        in_specs=[pl.BlockSpec((None, t_chunk, B, G), lambda d, tc: (d, tc, 0, 0)),
                  pl.BlockSpec((None, H, G), lambda d, tc: (d, 0, 0))],
        out_specs=pl.BlockSpec((None, t_chunk, B, H), lambda d, tc: (d, tc, 0, 0)),
        scratch_shapes=[pltpu.VMEM((B, H), jnp.float32),
                        pltpu.VMEM((B, H), jnp.float32)],
        compiler_params=pltpu.CompilerParams(
            dimension_semantics=("parallel", "arbitrary"),
            vmem_limit_bytes=32 * 1024 * 1024),
    )(gx_all, whh_stacked)
    return out[:, :T]


def _roi_pool_kernel(bins_ref, bidx_ref, feat_ref, out_ref, *, PH, PW):
    """RoI max pooling for one ROI via 2-level reduction.

    feat_ref:(H,W,C) for this ROI's batch image (gathered by the index_map).
    bins_ref: flat 1-D SMEM int32, per ROI [hs0,he0,...,hs_{PH-1},he_{PH-1},
    ws0,we0,...,ws_{PW-1},we_{PW-1}]. out_ref:(PH*PW, C).
    """
    r = pl.program_id(0)
    H, W, C = feat_ref.shape
    base = r * (2 * (PH + PW))
    feat = feat_ref[...]                                         # (H, W, C)
    h_idx = jax.lax.broadcasted_iota(jnp.int32, (H, 1, 1), 0)
    w_idx = jax.lax.broadcasted_iota(jnp.int32, (W, 1), 0)
    neg = jnp.float32(-jnp.inf)
    for ph in range(PH):                                         # static (PH == 2)
        hs = bins_ref[base + 2 * ph]
        he = bins_ref[base + 2 * ph + 1]
        hmask = (h_idx >= hs) & (h_idx < he)                     # (H,1,1)
        row = jnp.max(jnp.where(hmask, feat, neg), axis=0)       # (W, C): reduce over h once
        for pw in range(PW):                                     # static
            ws = bins_ref[base + 2 * PH + 2 * pw]
            we = bins_ref[base + 2 * PH + 2 * pw + 1]
            wmask = (w_idx >= ws) & (w_idx < we)                 # (W,1)
            mx = jnp.max(jnp.where(wmask, row, neg),
                         axis=0, keepdims=True)                  # (1, C)
            empty = jnp.logical_or(he <= hs, we <= ws)
            b = ph * PW + pw
            out_ref[b:b + 1, :] = jnp.where(empty, jnp.zeros_like(mx), mx)


def roi_max_pool(feat_nhwc, bins_flat, batch_idx, n_rois, PH, PW):
    """feat_nhwc:(B,H,W,C); bins_flat:(R*(2PH+2PW),) int32; batch_idx:(R,) int32."""
    B, H, W, C = feat_nhwc.shape
    PHW = PH * PW
    kernel = functools.partial(_roi_pool_kernel, PH=PH, PW=PW)
    return pl.pallas_call(
        kernel,
        out_shape=jax.ShapeDtypeStruct((n_rois, PHW, C), jnp.float32),
        grid_spec=pltpu.PrefetchScalarGridSpec(
            num_scalar_prefetch=2,
            grid=(n_rois,),
            in_specs=[pl.BlockSpec((None, H, W, C),
                                   lambda r, bins, bidx: (bidx[r], 0, 0, 0))],
            out_specs=pl.BlockSpec((None, PHW, C),
                                   lambda r, bins, bidx: (r, 0, 0))),
        compiler_params=pltpu.CompilerParams(
            dimension_semantics=("parallel",),
            vmem_limit_bytes=32 * 1024 * 1024),
    )(bins_flat, batch_idx, feat_nhwc)


# ---------------------------------------------------------------------------
# Parameters + module glue (plain JAX / numpy)
# ---------------------------------------------------------------------------

def init_bilstm_params(key, n_in, n_hidden, n_out):
    """Same init distributions as nn.LSTM/nn.Linear; weights pre-fused/transposed once."""
    ks = jax.random.split(key, 10)
    s = 1.0 / math.sqrt(n_hidden)
    u = lambda k, shape, bound: jax.random.uniform(k, shape, jnp.float32, -bound, bound)
    w_ih_f = u(ks[0], (4 * n_hidden, n_in), s)
    w_hh_f = u(ks[1], (4 * n_hidden, n_hidden), s)
    b_ih_f = u(ks[2], (4 * n_hidden,), s)
    b_hh_f = u(ks[3], (4 * n_hidden,), s)
    w_ih_b = u(ks[4], (4 * n_hidden, n_in), s)
    w_hh_b = u(ks[5], (4 * n_hidden, n_hidden), s)
    b_ih_b = u(ks[6], (4 * n_hidden,), s)
    b_hh_b = u(ks[7], (4 * n_hidden,), s)
    se = 1.0 / math.sqrt(2 * n_hidden)
    w_emb = u(ks[8], (n_out, 2 * n_hidden), se)
    b_emb = u(ks[9], (n_out,), se)
    return {
        # fwd/bwd input projections fused into one matmul; both LSTM biases folded in
        'w_ih_cat_t': jnp.concatenate([w_ih_f.T, w_ih_b.T], axis=1),      # (n_in, 8H)
        'b_ih_cat': jnp.concatenate([b_ih_f + b_hh_f, b_ih_b + b_hh_b]),  # (8H,)
        'w_hh_t': jnp.stack([w_hh_f.T, w_hh_b.T], axis=0),                # (2, H, 4H)
        'w_emb_t': w_emb.T,                                               # (2H, n_out)
        'b_emb': b_emb,
        'n_hidden': n_hidden,
    }


def bidirectional_lstm(x, p):
    """x: (T, B, nIn) -> (T, B, nOut). Matches BidirectionalLSTM.forward."""
    T, B, n_in = x.shape
    H = p['n_hidden']
    G = 4 * H
    x2 = x.reshape(T * B, n_in)
    gx = matmul_bias(x2, p['w_ih_cat_t'], p['b_ih_cat'])            # (T*B, 8H) one matmul
    gx_f = gx[:, :G].reshape(T, B, G)
    gx_b = gx[:, G:].reshape(T, B, G)
    gx_all = jnp.stack([gx_f, gx_b[::-1]], axis=0)                  # (2, T, B, 4H)
    h_all = lstm_scan_bidir(gx_all, p['w_hh_t'])                    # (2, T, B, H)
    recurrent = jnp.concatenate([h_all[0], h_all[1][::-1]], axis=-1)  # (T, B, 2H)
    out = matmul_bias(recurrent.reshape(T * B, 2 * H), p['w_emb_t'], p['b_emb'])
    return out.reshape(T, B, -1)


def _compute_roi_bins(rois_scaled, pooled_h, pooled_w, H, W):
    """Caffe-style RoI max-pool bin boundaries, vectorized; flat int32 layout per ROI:
    [hs0,he0,...,hs_{PH-1},he_{PH-1}, ws0,we0,...,ws_{PW-1},we_{PW-1}]."""
    R = rois_scaled.shape[0]
    sw = np.round(rois_scaled[:, 1]).astype(np.int64)
    sh = np.round(rois_scaled[:, 2]).astype(np.int64)
    ew = np.round(rois_scaled[:, 3]).astype(np.int64)
    eh = np.round(rois_scaled[:, 4]).astype(np.int64)
    roi_w = np.maximum(ew - sw + 1, 1)
    roi_h = np.maximum(eh - sh + 1, 1)
    bsh = roi_h / float(pooled_h)
    bsw = roi_w / float(pooled_w)
    ph = np.arange(pooled_h)
    pw = np.arange(pooled_w)
    hs = np.clip(np.floor(ph[None, :] * bsh[:, None]).astype(np.int64) + sh[:, None], 0, H)
    he = np.clip(np.ceil((ph[None, :] + 1) * bsh[:, None]).astype(np.int64) + sh[:, None], 0, H)
    ws = np.clip(np.floor(pw[None, :] * bsw[:, None]).astype(np.int64) + sw[:, None], 0, W)
    we = np.clip(np.ceil((pw[None, :] + 1) * bsw[:, None]).astype(np.int64) + sw[:, None], 0, W)
    hb = np.stack([hs, he], axis=-1).reshape(R, 2 * pooled_h)
    wb = np.stack([ws, we], axis=-1).reshape(R, 2 * pooled_w)
    return np.concatenate([hb, wb], axis=1).astype(np.int32).reshape(-1)


class OcrLossPallas:
    """Eval-path forward of OcrLoss (returns preds (T, num_rois, nclass))."""

    def __init__(self, alphabets, nh=256, seed=0):
        nclass = len(alphabets) + 1
        k1, k2 = jax.random.split(jax.random.PRNGKey(seed))
        # self.rnn = Sequential(BidirectionalLSTM(1024, nh, nh), BidirectionalLSTM(nh, nh, nclass))
        self.p1 = init_bilstm_params(k1, 1024, nh, nh)
        self.p2 = init_bilstm_params(k2, nh, nh, nclass)

    def forward(self, base_feat, rois):
        # base_feat: (B, C, H, W) f32 ; rois: (R, 5) = [batch_idx, x1, y1, x2, y2] normalized
        rois_np = np.asarray(rois, dtype=np.float32).copy()
        pooled_height = 2
        maxratio = float(np.max((rois_np[:, 3] - rois_np[:, 1]) /
                                (rois_np[:, 4] - rois_np[:, 2])))   # .item() in reference
        pooled_width = math.ceil(pooled_height * maxratio)
        B, C, H, W = base_feat.shape
        rois_np[:, [1, 3]] *= W
        rois_np[:, [2, 4]] *= H
        bins = _compute_roi_bins(rois_np, pooled_height, pooled_width, H, W)
        batch_idx = rois_np[:, 0].astype(np.int32)
        R = rois_np.shape[0]

        # single NCHW -> NHWC layout pass; the per-ROI gather happens inside the kernel's
        # index_map via scalar-prefetched batch_idx (no (R,C,H,W) duplication in HBM).
        feat_nhwc = jnp.transpose(base_feat, (0, 2, 3, 1))           # (B, H, W, C)
        pooled = roi_max_pool(feat_nhwc, jnp.asarray(bins), jnp.asarray(batch_idx),
                              R, pooled_height, pooled_width)        # (R, PH*PW, C)

        # pooled_feat.view(b, -1, w).permute(2, 0, 1) -> (T=PW, batch=R, C*PH)
        rnn_input = (pooled.reshape(R, pooled_height, pooled_width, C)
                     .transpose(2, 0, 3, 1)
                     .reshape(pooled_width, R, C * pooled_height))

        x = bidirectional_lstm(rnn_input, self.p1)
        preds = bidirectional_lstm(x, self.p2)
        # TODO(synk): training branch (CTC loss on preds vs text/text_length) not implemented.
        return preds


if __name__ == "__main__":
    key = jax.random.PRNGKey(0)
    kf, _ = jax.random.split(key)
    # C * pooled_height must equal 1024 (hard-coded nIn of the first LSTM) -> C = 512
    B, C, H, W = 1, 512, 8, 8
    base_feat = jax.random.normal(kf, (B, C, H, W), jnp.float32)
    rois = np.array([[0.0, 0.10, 0.20, 0.90, 0.60],
                     [0.0, 0.00, 0.10, 0.70, 0.50],
                     [0.0, 0.20, 0.30, 0.80, 0.70]], dtype=np.float32)

    model = OcrLossPallas(alphabets="0123456789", nh=32, seed=0)
    preds = model.forward(base_feat, rois)
    preds = jax.block_until_ready(preds)
    # maxratio = 2.0 -> pooled_width = 4 = T ; batch = 3 rois ; nclass = 11
    assert preds.shape == (4, 3, 11), preds.shape
    assert bool(jnp.all(jnp.isfinite(preds)))
    print("KERNEL_OK")
</pallas_src>

<mosaic_0001>
module attributes {stable_mosaic.version = 11 : i64} {
  func.func @_roi_pool_kernel(%arg0: i32, %arg1: memref<36xi32, #tpu.memory_space<smem>>, %arg2: memref<3xi32, #tpu.memory_space<smem>>, %arg3: memref<1x8x8x512xf32, #tpu.memory_space<vmem>>, %arg4: memref<1x8x512xf32, #tpu.memory_space<vmem>>) attributes {dimension_semantics = [#tpu.dimension_semantics<parallel>], iteration_bounds = array<i64: 3>, scalar_prefetch = 2 : i64, scratch_operands = 0 : i64, tpu.core_type = #tpu.core_type<tc>, window_params = [{transform_indices = @transform_0, window_bounds = array<i64: 1, 8, 8, 512>}, {transform_indices = @transform_1, window_bounds = array<i64: 1, 8, 512>}]} {
    %c12_i32 = arith.constant 12 : i32
    %0 = arith.muli %arg0, %c12_i32 : i32
    %c0 = arith.constant 0 : index
    %c0_0 = arith.constant 0 : index
    %c0_1 = arith.constant 0 : index
    %c0_2 = arith.constant 0 : index
    %1 = vector.load %arg3[%c0, %c0_0, %c0_1, %c0_2] : memref<1x8x8x512xf32, #tpu.memory_space<vmem>>, vector<1x8x8x512xf32>
    %2 = vector.shape_cast %1 : vector<1x8x8x512xf32> to vector<8x8x512xf32>
    %3 = tpu.iota {dimensions = array<i32: 0>} : vector<8x1x1xi32>
    %4 = tpu.iota {dimensions = array<i32: 0>} : vector<8x1xi32>
    %c0_i32 = arith.constant 0 : i32
    %5 = arith.addi %0, %c0_i32 : i32
    %6 = arith.index_cast %5 : i32 to index
    %7 = memref.load %arg1[%6] : memref<36xi32, #tpu.memory_space<smem>>
    %c0_i32_3 = arith.constant 0 : i32
    %8 = arith.addi %0, %c0_i32_3 : i32
    %c1_i32 = arith.constant 1 : i32
    %9 = arith.addi %8, %c1_i32 : i32
    %10 = arith.index_cast %9 : i32 to index
    %11 = memref.load %arg1[%10] : memref<36xi32, #tpu.memory_space<smem>>
    %12 = vector.broadcast %7 : i32 to vector<8x1x1xi32>
    %13 = arith.cmpi sge, %3, %12 : vector<8x1x1xi32>
    %14 = vector.broadcast %11 : i32 to vector<8x1x1xi32>
    %15 = arith.cmpi slt, %3, %14 : vector<8x1x1xi32>
    %16 = arith.andi %13, %15 : vector<8x1x1xi1>
    %cst = arith.constant 0xFF800000 : f32
    %17 = vector.shape_cast %16 : vector<8x1x1xi1> to vector<8x1x1xi1>
    %18 = vector.broadcast %17 : vector<8x1x1xi1> to vector<8x8x512xi1>
    %19 = vector.broadcast %cst : f32 to vector<8x8x512xf32>
    %20 = arith.select %18, %2, %19 : vector<8x8x512xi1>, vector<8x8x512xf32>
    %cst_4 = arith.constant dense<0xFF800000> : vector<8x512xf32>
    %21 = vector.multi_reduction <maximumf>, %20, %cst_4 [0] : vector<8x8x512xf32> to vector<8x512xf32>
    %c4_i32 = arith.constant 4 : i32
    %22 = arith.addi %0, %c4_i32 : i32
    %c0_i32_5 = arith.constant 0 : i32
    %23 = arith.addi %22, %c0_i32_5 : i32
    %24 = arith.index_cast %23 : i32 to index
    %25 = memref.load %arg1[%24] : memref<36xi32, #tpu.memory_space<smem>>
    %c4_i32_6 = arith.constant 4 : i32
    %26 = arith.addi %0, %c4_i32_6 : i32
    %c0_i32_7 = arith.constant 0 : i32
    %27 = arith.addi %26, %c0_i32_7 : i32
    %c1_i32_8 = arith.constant 1 : i32
    %28 = arith.addi %27, %c1_i32_8 : i32
    %29 = arith.index_cast %28 : i32 to index
    %30 = memref.load %arg1[%29] : memref<36xi32, #tpu.memory_space<smem>>
    %31 = vector.broadcast %25 : i32 to vector<8x1xi32>
    %32 = arith.cmpi sge, %4, %31 : vector<8x1xi32>
    %33 = vector.broadcast %30 : i32 to vector<8x1xi32>
    %34 = arith.cmpi slt, %4, %33 : vector<8x1xi32>
    %35 = arith.andi %32, %34 : vector<8x1xi1>
    %cst_9 = arith.constant 0xFF800000 : f32
    %36 = vector.shape_cast %35 : vector<8x1xi1> to vector<8x1xi1>
    %37 = vector.broadcast %36 : vector<8x1xi1> to vector<8x512xi1>
    %38 = vector.broadcast %cst_9 : f32 to vector<8x512xf32>
    %39 = arith.select %37, %21, %38 : vector<8x512xi1>, vector<8x512xf32>
    %cst_10 = arith.constant dense<0xFF800000> : vector<512xf32>
    %40 = vector.multi_reduction <maximumf>, %39, %cst_10 [0] : vector<8x512xf32> to vector<512xf32>
    %41 = vector.shape_cast %40 : vector<512xf32> to vector<1x512xf32>
    %42 = arith.cmpi sle, %11, %7 : i32
    %43 = arith.cmpi sle, %30, %25 : i32
    %44 = arith.ori %42, %43 : i1
    %cst_11 = arith.constant 0.000000e+00 : f32
    %45 = vector.broadcast %cst_11 : f32 to vector<1x512xf32>
    %46 = arith.select %44, %45, %41 : vector<1x512xf32>
    %c0_12 = arith.constant 0 : index
    %c0_13 = arith.constant 0 : index
    %c0_14 = arith.constant 0 : index
    %47 = vector.load %arg4[%c0_12, %c0_13, %c0_14] : memref<1x8x512xf32, #tpu.memory_space<vmem>>, vector<1x1x512xf32>
    %48 = vector.shape_cast %47 : vector<1x1x512xf32> to vector<1x512xf32>
    %49 = vector.shape_cast %46 : vector<1x512xf32> to vector<1x1x512xf32>
    tpu.vector_store %arg4[%c0_12, %c0_13, %c0_14], %49 {strides = array<i32>} : memref<1x8x512xf32, #tpu.memory_space<vmem>>, vector<1x1x512xf32>,
    %c4_i32_15 = arith.constant 4 : i32
    %50 = arith.addi %0, %c4_i32_15 : i32
    %c2_i32 = arith.constant 2 : i32
    %51 = arith.addi %50, %c2_i32 : i32
    %52 = arith.index_cast %51 : i32 to index
    %53 = memref.load %arg1[%52] : memref<36xi32, #tpu.memory_space<smem>>
    %c4_i32_16 = arith.constant 4 : i32
    %54 = arith.addi %0, %c4_i32_16 : i32
    %c2_i32_17 = arith.constant 2 : i32
    %55 = arith.addi %54, %c2_i32_17 : i32
    %c1_i32_18 = arith.constant 1 : i32
    %56 = arith.addi %55, %c1_i32_18 : i32
    %57 = arith.index_cast %56 : i32 to index
    %58 = memref.load %arg1[%57] : memref<36xi32, #tpu.memory_space<smem>>
    %59 = vector.broadcast %53 : i32 to vector<8x1xi32>
    %60 = arith.cmpi sge, %4, %59 : vector<8x1xi32>
    %61 = vector.broadcast %58 : i32 to vector<8x1xi32>
    %62 = arith.cmpi slt, %4, %61 : vector<8x1xi32>
    %63 = arith.andi %60, %62 : vector<8x1xi1>
    %cst_19 = arith.constant 0xFF800000 : f32
    %64 = vector.shape_cast %63 : vector<8x1xi1> to vector<8x1xi1>
    %65 = vector.broadcast %64 : vector<8x1xi1> to vector<8x512xi1>
    %66 = vector.broadcast %cst_19 : f32 to vector<8x512xf32>
    %67 = arith.select %65, %21, %66 : vector<8x512xi1>, vector<8x512xf32>
    %cst_20 = arith.constant dense<0xFF800000> : vector<512xf32>
    %68 = vector.multi_reduction <maximumf>, %67, %cst_20 [0] : vector<8x512xf32> to vector<512xf32>
    %69 = vector.shape_cast %68 : vector<512xf32> to vector<1x512xf32>
    %70 = arith.cmpi sle, %11, %7 : i32
    %71 = arith.cmpi sle, %58, %53 : i32
    %72 = arith.ori %70, %71 : i1
    %cst_21 = arith.constant 0.000000e+00 : f32
    %73 = vector.broadcast %cst_21 : f32 to vector<1x512xf32>
    %74 = arith.select %72, %73, %69 : vector<1x512xf32>
    %c0_22 = arith.constant 0 : index
    %c1 = arith.constant 1 : index
    %c0_23 = arith.constant 0 : index
    %75 = vector.load %arg4[%c0_22, %c1, %c0_23] : memref<1x8x512xf32, #tpu.memory_space<vmem>>, vector<1x1x512xf32>
    %76 = vector.shape_cast %75 : vector<1x1x512xf32> to vector<1x512xf32>
    %77 = vector.shape_cast %74 : vector<1x512xf32> to vector<1x1x512xf32>
    tpu.vector_store %arg4[%c0_22, %c1, %c0_23], %77 {strides = array<i32>} : memref<1x8x512xf32, #tpu.memory_space<vmem>>, vector<1x1x512xf32>,
    %c4_i32_24 = arith.constant 4 : i32
    %78 = arith.addi %0, %c4_i32_24 : i32
    %c4_i32_25 = arith.constant 4 : i32
    %79 = arith.addi %78, %c4_i32_25 : i32
    %80 = arith.index_cast %79 : i32 to index
    %81 = memref.load %arg1[%80] : memref<36xi32, #tpu.memory_space<smem>>
    %c4_i32_26 = arith.constant 4 : i32
    %82 = arith.addi %0, %c4_i32_26 : i32
    %c4_i32_27 = arith.constant 4 : i32
    %83 = arith.addi %82, %c4_i32_27 : i32
    %c1_i32_28 = arith.constant 1 : i32
    %84 = arith.addi %83, %c1_i32_28 : i32
    %85 = arith.index_cast %84 : i32 to index
    %86 = memref.load %arg1[%85] : memref<36xi32, #tpu.memory_space<smem>>
    %87 = vector.broadcast %81 : i32 to vector<8x1xi32>
    %88 = arith.cmpi sge, %4, %87 : vector<8x1xi32>
    %89 = vector.broadcast %86 : i32 to vector<8x1xi32>
    %90 = arith.cmpi slt, %4, %89 : vector<8x1xi32>
    %91 = arith.andi %88, %90 : vector<8x1xi1>
    %cst_29 = arith.constant 0xFF800000 : f32
    %92 = vector.shape_cast %91 : vector<8x1xi1> to vector<8x1xi1>
    %93 = vector.broadcast %92 : vector<8x1xi1> to vector<8x512xi1>
    %94 = vector.broadcast %cst_29 : f32 to vector<8x512xf32>
    %95 = arith.select %93, %21, %94 : vector<8x512xi1>, vector<8x512xf32>
    %cst_30 = arith.constant dense<0xFF800000> : vector<512xf32>
    %96 = vector.multi_reduction <maximumf>, %95, %cst_30 [0] : vector<8x512xf32> to vector<512xf32>
    %97 = vector.shape_cast %96 : vector<512xf32> to vector<1x512xf32>
    %98 = arith.cmpi sle, %11, %7 : i32
    %99 = arith.cmpi sle, %86, %81 : i32
    %100 = arith.ori %98, %99 : i1
    %cst_31 = arith.constant 0.000000e+00 : f32
    %101 = vector.broadcast %cst_31 : f32 to vector<1x512xf32>
    %102 = arith.select %100, %101, %97 : vector<1x512xf32>
    %c0_32 = arith.constant 0 : index
    %c2 = arith.constant 2 : index
    %c0_33 = arith.constant 0 : index
    %103 = vector.load %arg4[%c0_32, %c2, %c0_33] : memref<1x8x512xf32, #tpu.memory_space<vmem>>, vector<1x1x512xf32>
    %104 = vector.shape_cast %103 : vector<1x1x512xf32> to vector<1x512xf32>
    %105 = vector.shape_cast %102 : vector<1x512xf32> to vector<1x1x512xf32>
    tpu.vector_store %arg4[%c0_32, %c2, %c0_33], %105 {strides = array<i32>} : memref<1x8x512xf32, #tpu.memory_space<vmem>>, vector<1x1x512xf32>,
    %c4_i32_34 = arith.constant 4 : i32
    %106 = arith.addi %0, %c4_i32_34 : i32
    %c6_i32 = arith.constant 6 : i32
    %107 = arith.addi %106, %c6_i32 : i32
    %108 = arith.index_cast %107 : i32 to index
    %109 = memref.load %arg1[%108] : memref<36xi32, #tpu.memory_space<smem>>
    %c4_i32_35 = arith.constant 4 : i32
    %110 = arith.addi %0, %c4_i32_35 : i32
    %c6_i32_36 = arith.constant 6 : i32
    %111 = arith.addi %110, %c6_i32_36 : i32
    %c1_i32_37 = arith.constant 1 : i32
    %112 = arith.addi %111, %c1_i32_37 : i32
    %113 = arith.index_cast %112 : i32 to index
    %114 = memref.load %arg1[%113] : memref<36xi32, #tpu.memory_space<smem>>
    %115 = vector.broadcast %109 : i32 to vector<8x1xi32>
    %116 = arith.cmpi sge, %4, %115 : vector<8x1xi32>
    %117 = vector.broadcast %114 : i32 to vector<8x1xi32>
    %118 = arith.cmpi slt, %4, %117 : vector<8x1xi32>
    %119 = arith.andi %116, %118 : vector<8x1xi1>
    %cst_38 = arith.constant 0xFF800000 : f32
    %120 = vector.shape_cast %119 : vector<8x1xi1> to vector<8x1xi1>
    %121 = vector.broadcast %120 : vector<8x1xi1> to vector<8x512xi1>
    %122 = vector.broadcast %cst_38 : f32 to vector<8x512xf32>
    %123 = arith.select %121, %21, %122 : vector<8x512xi1>, vector<8x512xf32>
    %cst_39 = arith.constant dense<0xFF800000> : vector<512xf32>
    %124 = vector.multi_reduction <maximumf>, %123, %cst_39 [0] : vector<8x512xf32> to vector<512xf32>
    %125 = vector.shape_cast %124 : vector<512xf32> to vector<1x512xf32>
    %126 = arith.cmpi sle, %11, %7 : i32
    %127 = arith.cmpi sle, %114, %109 : i32
    %128 = arith.ori %126, %127 : i1
    %cst_40 = arith.constant 0.000000e+00 : f32
    %129 = vector.broadcast %cst_40 : f32 to vector<1x512xf32>
    %130 = arith.select %128, %129, %125 : vector<1x512xf32>
    %c0_41 = arith.constant 0 : index
    %c3 = arith.constant 3 : index
    %c0_42 = arith.constant 0 : index
    %131 = vector.load %arg4[%c0_41, %c3, %c0_42] : memref<1x8x512xf32, #tpu.memory_space<vmem>>, vector<1x1x512xf32>
    %132 = vector.shape_cast %131 : vector<1x1x512xf32> to vector<1x512xf32>
    %133 = vector.shape_cast %130 : vector<1x512xf32> to vector<1x1x512xf32>
    tpu.vector_store %arg4[%c0_41, %c3, %c0_42], %133 {strides = array<i32>} : memref<1x8x512xf32, #tpu.memory_space<vmem>>, vector<1x1x512xf32>,
    %c2_i32_43 = arith.constant 2 : i32
    %134 = arith.addi %0, %c2_i32_43 : i32
    %135 = arith.index_cast %134 : i32 to index
    %136 = memref.load %arg1[%135] : memref<36xi32, #tpu.memory_space<smem>>
    %c2_i32_44 = arith.constant 2 : i32
    %137 = arith.addi %0, %c2_i32_44 : i32
    %c1_i32_45 = arith.constant 1 : i32
    %138 = arith.addi %137, %c1_i32_45 : i32
    %139 = arith.index_cast %138 : i32 to index
    %140 = memref.load %arg1[%139] : memref<36xi32, #tpu.memory_space<smem>>
    %141 = vector.broadcast %136 : i32 to vector<8x1x1xi32>
    %142 = arith.cmpi sge, %3, %141 : vector<8x1x1xi32>
    %143 = vector.broadcast %140 : i32 to vector<8x1x1xi32>
    %144 = arith.cmpi slt, %3, %143 : vector<8x1x1xi32>
    %145 = arith.andi %142, %144 : vector<8x1x1xi1>
    %cst_46 = arith.constant 0xFF800000 : f32
    %146 = vector.shape_cast %145 : vector<8x1x1xi1> to vector<8x1x1xi1>
    %147 = vector.broadcast %146 : vector<8x1x1xi1> to vector<8x8x512xi1>
    %148 = vector.broadcast %cst_46 : f32 to vector<8x8x512xf32>
    %149 = arith.select %147, %2, %148 : vector<8x8x512xi1>, vector<8x8x512xf32>
    %cst_47 = arith.constant dense<0xFF800000> : vector<8x512xf32>
    %150 = vector.multi_reduction <maximumf>, %149, %cst_47 [0] : vector<8x8x512xf32> to vector<8x512xf32>
    %c4_i32_48 = arith.constant 4 : i32
    %151 = arith.addi %0, %c4_i32_48 : i32
    %c0_i32_49 = arith.constant 0 : i32
    %152 = arith.addi %151, %c0_i32_49 : i32
    %153 = arith.index_cast %152 : i32 to index
    %154 = memref.load %arg1[%153] : memref<36xi32, #tpu.memory_space<smem>>
    %c4_i32_50 = arith.constant 4 : i32
    %155 = arith.addi %0, %c4_i32_50 : i32
    %c0_i32_51 = arith.constant 0 : i32
    %156 = arith.addi %155, %c0_i32_51 : i32
    %c1_i32_52 = arith.constant 1 : i32
    %157 = arith.addi %156, %c1_i32_52 : i32
    %158 = arith.index_cast %157 : i32 to index
    %159 = memref.load %arg1[%158] : memref<36xi32, #tpu.memory_space<smem>>
    %160 = vector.broadcast %154 : i32 to vector<8x1xi32>
    %161 = arith.cmpi sge, %4, %160 : vector<8x1xi32>
    %162 = vector.broadcast %159 : i32 to vector<8x1xi32>
    %163 = arith.cmpi slt, %4, %162 : vector<8x1xi32>
    %164 = arith.andi %161, %163 : vector<8x1xi1>
    %cst_53 = arith.constant 0xFF800000 : f32
    %165 = vector.shape_cast %164 : vector<8x1xi1> to vector<8x1xi1>
    %166 = vector.broadcast %165 : vector<8x1xi1> to vector<8x512xi1>
    %167 = vector.broadcast %cst_53 : f32 to vector<8x512xf32>
    %168 = arith.select %166, %150, %167 : vector<8x512xi1>, vector<8x512xf32>
    %cst_54 = arith.constant dense<0xFF800000> : vector<512xf32>
    %169 = vector.multi_reduction <maximumf>, %168, %cst_54 [0] : vector<8x512xf32> to vector<512xf32>
    %170 = vector.shape_cast %169 : vector<512xf32> to vector<1x512xf32>
    %171 = arith.cmpi sle, %140, %136 : i32
    %172 = arith.cmpi sle, %159, %154 : i32
    %173 = arith.ori %171, %172 : i1
    %cst_55 = arith.constant 0.000000e+00 : f32
    %174 = vector.broadcast %cst_55 : f32 to vector<1x512xf32>
    %175 = arith.select %173, %174, %170 : vector<1x512xf32>
    %c0_56 = arith.constant 0 : index
    %c4 = arith.constant 4 : index
    %c0_57 = arith.constant 0 : index
    %176 = vector.load %arg4[%c0_56, %c4, %c0_57] : memref<1x8x512xf32, #tpu.memory_space<vmem>>, vector<1x1x512xf32>
    %177 = vector.shape_cast %176 : vector<1x1x512xf32> to vector<1x512xf32>
    %178 = vector.shape_cast %175 : vector<1x512xf32> to vector<1x1x512xf32>
    tpu.vector_store %arg4[%c0_56, %c4, %c0_57], %178 {strides = array<i32>} : memref<1x8x512xf32, #tpu.memory_space<vmem>>, vector<1x1x512xf32>,
    %c4_i32_58 = arith.constant 4 : i32
    %179 = arith.addi %0, %c4_i32_58 : i32
    %c2_i32_59 = arith.constant 2 : i32
    %180 = arith.addi %179, %c2_i32_59 : i32
    %181 = arith.index_cast %180 : i32 to index
    %182 = memref.load %arg1[%181] : memref<36xi32, #tpu.memory_space<smem>>
    %c4_i32_60 = arith.constant 4 : i32
    %183 = arith.addi %0, %c4_i32_60 : i32
    %c2_i32_61 = arith.constant 2 : i32
    %184 = arith.addi %183, %c2_i32_61 : i32
    %c1_i32_62 = arith.constant 1 : i32
    %185 = arith.addi %184, %c1_i32_62 : i32
    %186 = arith.index_cast %185 : i32 to index
    %187 = memref.load %arg1[%186] : memref<36xi32, #tpu.memory_space<smem>>
    %188 = vector.broadcast %182 : i32 to vector<8x1xi32>
    %189 = arith.cmpi sge, %4, %188 : vector<8x1xi32>
    %190 = vector.broadcast %187 : i32 to vector<8x1xi32>
    %191 = arith.cmpi slt, %4, %190 : vector<8x1xi32>
    %192 = arith.andi %189, %191 : vector<8x1xi1>
    %cst_63 = arith.constant 0xFF800000 : f32
    %193 = vector.shape_cast %192 : vector<8x1xi1> to vector<8x1xi1>
    %194 = vector.broadcast %193 : vector<8x1xi1> to vector<8x512xi1>
    %195 = vector.broadcast %cst_63 : f32 to vector<8x512xf32>
    %196 = arith.select %194, %150, %195 : vector<8x512xi1>, vector<8x512xf32>
    %cst_64 = arith.constant dense<0xFF800000> : vector<512xf32>
    %197 = vector.multi_reduction <maximumf>, %196, %cst_64 [0] : vector<8x512xf32> to vector<512xf32>
    %198 = vector.shape_cast %197 : vector<512xf32> to vector<1x512xf32>
    %199 = arith.cmpi sle, %140, %136 : i32
    %200 = arith.cmpi sle, %187, %182 : i32
    %201 = arith.ori %199, %200 : i1
    %cst_65 = arith.constant 0.000000e+00 : f32
    %202 = vector.broadcast %cst_65 : f32 to vector<1x512xf32>
    %203 = arith.select %201, %202, %198 : vector<1x512xf32>
    %c0_66 = arith.constant 0 : index
    %c5 = arith.constant 5 : index
    %c0_67 = arith.constant 0 : index
    %204 = vector.load %arg4[%c0_66, %c5, %c0_67] : memref<1x8x512xf32, #tpu.memory_space<vmem>>, vector<1x1x512xf32>
    %205 = vector.shape_cast %204 : vector<1x1x512xf32> to vector<1x512xf32>
    %206 = vector.shape_cast %203 : vector<1x512xf32> to vector<1x1x512xf32>
    tpu.vector_store %arg4[%c0_66, %c5, %c0_67], %206 {strides = array<i32>} : memref<1x8x512xf32, #tpu.memory_space<vmem>>, vector<1x1x512xf32>,
    %c4_i32_68 = arith.constant 4 : i32
    %207 = arith.addi %0, %c4_i32_68 : i32
    %c4_i32_69 = arith.constant 4 : i32
    %208 = arith.addi %207, %c4_i32_69 : i32
    %209 = arith.index_cast %208 : i32 to index
    %210 = memref.load %arg1[%209] : memref<36xi32, #tpu.memory_space<smem>>
    %c4_i32_70 = arith.constant 4 : i32
    %211 = arith.addi %0, %c4_i32_70 : i32
    %c4_i32_71 = arith.constant 4 : i32
    %212 = arith.addi %211, %c4_i32_71 : i32
    %c1_i32_72 = arith.constant 1 : i32
    %213 = arith.addi %212, %c1_i32_72 : i32
    %214 = arith.index_cast %213 : i32 to index
    %215 = memref.load %arg1[%214] : memref<36xi32, #tpu.memory_space<smem>>
    %216 = vector.broadcast %210 : i32 to vector<8x1xi32>
    %217 = arith.cmpi sge, %4, %216 : vector<8x1xi32>
    %218 = vector.broadcast %215 : i32 to vector<8x1xi32>
    %219 = arith.cmpi slt, %4, %218 : vector<8x1xi32>
    %220 = arith.andi %217, %219 : vector<8x1xi1>
    %cst_73 = arith.constant 0xFF800000 : f32
    %221 = vector.shape_cast %220 : vector<8x1xi1> to vector<8x1xi1>
    %222 = vector.broadcast %221 : vector<8x1xi1> to vector<8x512xi1>
    %223 = vector.broadcast %cst_73 : f32 to vector<8x512xf32>
    %224 = arith.select %222, %150, %223 : vector<8x512xi1>, vector<8x512xf32>
    %cst_74 = arith.constant dense<0xFF800000> : vector<512xf32>
    %225 = vector.multi_reduction <maximumf>, %224, %cst_74 [0] : vector<8x512xf32> to vector<512xf32>
    %226 = vector.shape_cast %225 : vector<512xf32> to vector<1x512xf32>
    %227 = arith.cmpi sle, %140, %136 : i32
    %228 = arith.cmpi sle, %215, %210 : i32
    %229 = arith.ori %227, %228 : i1
    %cst_75 = arith.constant 0.000000e+00 : f32
    %230 = vector.broadcast %cst_75 : f32 to vector<1x512xf32>
    %231 = arith.select %229, %230, %226 : vector<1x512xf32>
    %c0_76 = arith.constant 0 : index
    %c6 = arith.constant 6 : index
    %c0_77 = arith.constant 0 : index
    %232 = vector.load %arg4[%c0_76, %c6, %c0_77] : memref<1x8x512xf32, #tpu.memory_space<vmem>>, vector<1x1x512xf32>
    %233 = vector.shape_cast %232 : vector<1x1x512xf32> to vector<1x512xf32>
    %234 = vector.shape_cast %231 : vector<1x512xf32> to vector<1x1x512xf32>
    tpu.vector_store %arg4[%c0_76, %c6, %c0_77], %234 {strides = array<i32>} : memref<1x8x512xf32, #tpu.memory_space<vmem>>, vector<1x1x512xf32>,
    %c4_i32_78 = arith.constant 4 : i32
    %235 = arith.addi %0, %c4_i32_78 : i32
    %c6_i32_79 = arith.constant 6 : i32
    %236 = arith.addi %235, %c6_i32_79 : i32
    %237 = arith.index_cast %236 : i32 to index
    %238 = memref.load %arg1[%237] : memref<36xi32, #tpu.memory_space<smem>>
    %c4_i32_80 = arith.constant 4 : i32
    %239 = arith.addi %0, %c4_i32_80 : i32
    %c6_i32_81 = arith.constant 6 : i32
    %240 = arith.addi %239, %c6_i32_81 : i32
    %c1_i32_82 = arith.constant 1 : i32
    %241 = arith.addi %240, %c1_i32_82 : i32
    %242 = arith.index_cast %241 : i32 to index
    %243 = memref.load %arg1[%242] : memref<36xi32, #tpu.memory_space<smem>>
    %244 = vector.broadcast %238 : i32 to vector<8x1xi32>
    %245 = arith.cmpi sge, %4, %244 : vector<8x1xi32>
    %246 = vector.broadcast %243 : i32 to vector<8x1xi32>
    %247 = arith.cmpi slt, %4, %246 : vector<8x1xi32>
    %248 = arith.andi %245, %247 : vector<8x1xi1>
    %cst_83 = arith.constant 0xFF800000 : f32
    %249 = vector.shape_cast %248 : vector<8x1xi1> to vector<8x1xi1>
    %250 = vector.broadcast %249 : vector<8x1xi1> to vector<8x512xi1>
    %251 = vector.broadcast %cst_83 : f32 to vector<8x512xf32>
    %252 = arith.select %250, %150, %251 : vector<8x512xi1>, vector<8x512xf32>
    %cst_84 = arith.constant dense<0xFF800000> : vector<512xf32>
    %253 = vector.multi_reduction <maximumf>, %252, %cst_84 [0] : vector<8x512xf32> to vector<512xf32>
    %254 = vector.shape_cast %253 : vector<512xf32> to vector<1x512xf32>
    %255 = arith.cmpi sle, %140, %136 : i32
    %256 = arith.cmpi sle, %243, %238 : i32
    %257 = arith.ori %255, %256 : i1
    %cst_85 = arith.constant 0.000000e+00 : f32
    %258 = vector.broadcast %cst_85 : f32 to vector<1x512xf32>
    %259 = arith.select %257, %258, %254 : vector<1x512xf32>
    %c0_86 = arith.constant 0 : index
    %c7 = arith.constant 7 : index
    %c0_87 = arith.constant 0 : index
    %260 = vector.load %arg4[%c0_86, %c7, %c0_87] : memref<1x8x512xf32, #tpu.memory_space<vmem>>, vector<1x1x512xf32>
    %261 = vector.shape_cast %260 : vector<1x1x512xf32> to vector<1x512xf32>
    %262 = vector.shape_cast %259 : vector<1x512xf32> to vector<1x1x512xf32>
    tpu.vector_store %arg4[%c0_86, %c7, %c0_87], %262 {strides = array<i32>} : memref<1x8x512xf32, #tpu.memory_space<vmem>>, vector<1x1x512xf32>,
    return
  }
  func.func @transform_0(%arg0: i32, %arg1: memref<36xi32, #tpu.memory_space<smem>>, %arg2: memref<3xi32, #tpu.memory_space<smem>>) -> (i32, i32, i32, i32) {
    %0 = arith.index_cast %arg0 : i32 to index
    %1 = memref.load %arg2[%0] : memref<3xi32, #tpu.memory_space<smem>>
    %c0_i32 = arith.constant 0 : i32
    %c0_i32_0 = arith.constant 0 : i32
    %c0_i32_1 = arith.constant 0 : i32
    %c0_i32_2 = arith.constant 0 : i32
    return %1, %c0_i32, %c0_i32_0, %c0_i32_1 : i32, i32, i32, i32
  }
  func.func @transform_1(%arg0: i32, %arg1: memref<36xi32, #tpu.memory_space<smem>>, %arg2: memref<3xi32, #tpu.memory_space<smem>>) -> (i32, i32, i32) {
    %c0_i32 = arith.constant 0 : i32
    %c0_i32_0 = arith.constant 0 : i32
    %c0_i32_1 = arith.constant 0 : i32
    return %arg0, %c0_i32, %c0_i32_0 : i32, i32, i32
  }
}

</mosaic_0001>

<bundles_post_ra>
// kernel: tpu_custom_call.1
= control target key start
LH: loop header
LB: loop body
LE: loop exit
PB: predicated region body
PF: predicated region fallthrough
CT: control target
= control target key end

     0   :  { %s1359_s12 = smov [#allocation3]   ;;  %s2662_s0 = inlined_call_operand.hbm [shape: s32[36], index: 0, kind: input, shape index: {}]   ;;  %s2663_s2 = inlined_call_operand.hbm [shape: f32[1,8,8,512], index: 2, kind: input, shape index: {}]   ;;  %s2664_s3 = inlined_call_operand.hbm [shape: f32[3,8,512], index: 3, kind: output, shape index: {}]   ;;  %s2665_s1 = inlined_call_operand.vmem [shape: s32[3], index: 1, kind: input, shape index: {}]  }
   0x1   :  { %9 = dma.hbm_to_smem %s2662_s0, 16, %s1359_s12, [#allocation2] }
   0x2   :  { %s10_s17 = sshll.u32 %s2665_s1, 4  ;;  %s11_s17 = int_to_ptr.vmem [resolvable:$true] %s10_s17 }
   0x3   :  { %s1227_s18 = scalar_lea.vmem %s11_s17, 16  ;;  %p1232_p1 = scmp.lt.s32.totalorder %s11_s17, %s11_s17 }
   0x4   :  { %p1228_p0 = scmp.ne.s32.totalorder %s11_s17, %s1227_s18  ;;  %p1233_p2 = scmp.lt.s32.totalorder %s1227_s18, %s1227_s18 }
   0x6   :  { %p1234_p3 = por %p1233_p2, %p1232_p1 }
   0x8   :  { %p1235_p4 = pnand %p1234_p3, %p1228_p0 }
   0xa   :  { %1238 = shalt.err (!%p1235_p4)  }
   0xb   :  { %s1360_s19 = smov [#allocation4]  }
   0xc   :  { %13 = dma.vmem_to_smem %s11_s17, 16, %s1360_s19, [#allocation2] }
   0xd   :  { %1321 = dma.done.wait [#allocation2], 32 }
   0xe   :  { %1322 = vsyncadd [#allocation2], 4294967264 }
   0xf   :  { %15 = sfence }
  0x10   :  { %16 = vsyncpa [#allocation6], 0 }
  0x11   :  { %18 = vsyncpa [#allocation6 + $0x1], 0 }
  0x12   :  { %19 = vsyncpa [#allocation7], 0 }
  0x13   :  { %21 = vsyncpa [#allocation7 + $0x1], 0  ;;  %s1392_s0 = smov 0   ;;  %s1394_s1 = smov 0  }
  0x14   :  { %s1396_s20 = smov 0   ;;  %s1398_s21 = smov 0  }
  0x15   :  { %s1400_s22 = smov 0   ;;  %s1402_s23 = smov 0  }
  0x16   :  { %s1404_s24 = smov 0  }
  0x17 LB: > { %s1426_s25 = sadd.s32 4294967295, %s1357_s24   ;;  %s1117_s26 = sadd.s32 4294967294, %s1357_s24   ;;  %s1357_s24 = sphi %s1404_s24, %s2825_s24   ;;  %s1353_s23 = sphi %s1402_s23, %s2824_s23   ;;  %s1349_s22 = sphi %s1400_s22, %s2823_s22   ;;  %s1345_s21 = sphi %s1398_s21, %s2822_s21   ;;  %s1341_s20 = sphi %s1396_s20, %s2821_s20   ;;  %s1337_s1 = sphi %s1394_s1, %s2820_s1   ;;  %s1333_s0 = sphi %s1392_s0, %s2819_s0  }
  0x18   : > { %s1430_s27 = sadd.s32 1, %s1357_s24   ;;  %s31_s28 = sld [smem:[#allocation4 + %s1357_s24]] }
  0x19   : > { %s32_s29 = sld [smem:[#allocation4 + %s1430_s27]]  ;;  %s36_s30 = sadd.s32 1, %s1353_s23 }
  0x1a   : > { %p43_p5 = scmp.ne.s32.totalorder %s1353_s23, %s1349_s22  ;;  %p44_p6 = scmp.eq.s32.totalorder %s1357_s24, 0 }
  0x1b   : > { %p49_p7 = scmp.ne.s32.totalorder %s1349_s22, %s1345_s21  ;;  %p50_p8 = scmp.eq.s32.totalorder %s1426_s25, 0 }
  0x1c   : > { %p1440_p9 = por %p44_p6, %p43_p5  ;;  %s59_s5 = ssub.s32 %s1357_s24, %s1430_s27 }
  0x1d   : > { %p1446_p10 = por %p50_p8, %p49_p7  ;;  %p60_p11 = scmp.eq.s32.totalorder %s59_s5, 0 }
  0x1e   : > { %s62_s7 = sadd.s32 1, %s1341_s20  ;;  %p72_p12 = scmp.ne.s32.totalorder %s1341_s20, %s1337_s1 }
  0x1f   : > { %s2688_s6 = scalar_select %p1446_p10, 1, 0 }
  0x20   : > { %s33_s8 = ssub.s32 %s31_s28, %s32_s29  ;;  %p73_p13 = scmp.eq.s32.totalorder %s1426_s25, 2 }
  0x21   : > { %p34_p0 = scmp.eq.s32.totalorder %s33_s8, 0  ;;  %p78_p1 = scmp.ne.s32.totalorder %s1337_s1, %s1333_s0 }
  0x22   : > { %s1457_s9 = scalar_select %p60_p11, %s1341_s20, %s62_s7  }
  0x23   : > { %s1460_s10 = scalar_select %p34_p0, %s1353_s23, %s36_s30  }
  0x24   : > { %p1462_p2 = por %p73_p13, %p72_p12  ;;  %p79_p3 = scmp.eq.s32.totalorder %s1117_s26, 2 }
  0x25   : > { %p1156_p4 = scmp.lt.s32.totalorder %s1357_s24, 3  ;;  %s99_s13 = sand.u32 1, %s1353_s23  }
  0x26   : > { %s2689_s11 = scalar_select %p1462_p2, 1, 0 }
  0x27   : > { %p1467_p5 = por %p79_p3, %p78_p1  ;;  %s1120_s14 = sshll.u32 %s99_s13, 8 }
  0x28   : > { %p1474_p6 = pnand %p1156_p4, %p1440_p9  ;;  %s103_s19 = scalar_lea.vmem [#allocation5], %s1120_s14 }
  0x29   : > { %s2690_s12 = scalar_select %p1467_p5, 1, 0 }
  0x2a   : > { %s1140_s16 = scalar_select %p1440_p9, [#allocation4], [#allocation9] }
  0x2b   : > { %s1141_s17 = scalar_select %p1440_p9, %s1357_s24, 0 }
  0x2c   : > { %s2827_s16 = smov (!%p1156_p4, %s1140_s16), [#allocation10]  ;;  %s111_s21 = sshll.u32 %s103_s19, 4  ;;  %s1485_s21 = int_to_ptr.vmem [resolvable:$true] %s111_s21 }
  0x2d   : > { %s2829_s17 = smov (!%p1156_p4, %s1141_s17), 0  ;;  %p1123_p7 = scmp.ge.s32.totalorder %s1357_s24, 1 }
  0x2e   : > { %s104_s18 = sld [smem:[%s2827_s16 + %s2829_s17]]  ;;  %p119_p8 = scmp.lt.s32.totalorder %s1357_s24, 4 }
  0x2f   : > { %s1496_s5 = scalar_lea.sflag [#allocation6], %s99_s13  ;;  %p1241_p12 = pneg %p1474_p6 }
  0x30   : > { %p1487_p11 = pnand %p1123_p7, %p119_p8  ;;  %s1244_s16 = scalar_lea.hbm %s2663_s2, 4096 }
  0x32   : > { %s2692_s26 = scalar_select %p1487_p11, 1, 0 }
  0x34   : > { %s1138_s28 = sshll.u32 %s104_s18, 12 }
  0x35   : > { %s1494_s4 = scalar_lea.hbm %s2663_s2, %s1138_s28 }
  0x36   : > { %s1239_s7 = scalar_lea.hbm %s1494_s4, 4096  ;;  %p1245_p1 = scmp.lt.s32.totalorder %s1494_s4, %s2663_s2 }
  0x37   : > { %p1240_p9 = scmp.ne.s32.totalorder %s1494_s4, %s1239_s7  ;;  %p1246_p3 = scmp.lt.s32.totalorder %s1244_s16, %s1239_s7 }
  0x39   : > { %p1242_p13 = pnand %p1241_p12, %p1240_p9  ;;  %p1247_p4 = por %p1246_p3, %p1245_p1 }
  0x3b   : > { %p1243_p0 = pneg %p1242_p13 }
  0x3d   : > { %p1248_p7 = pnand %p1247_p4, %p1243_p0 }
  0x3f   : > { %1251 = shalt.err (!%p1248_p7)
}
  0x40   : > { %s1252_s13 = scalar_lea.vmem %s1485_s21, 4096  ;;  %s1361_s19 = smov [#allocation5]  }
  0x41   : > { %p1253_p8 = scmp.ne.s32.totalorder %s1485_s21, %s1252_s13  ;;  %s1257_s28 = sshll.u32 %s1361_s19, 4  ;;  %s1258_s28 = int_to_ptr.vmem [resolvable:$false] %s1257_s28 }
  0x42   : > { %s1259_s29 = scalar_lea.vmem %s1258_s28, 8192  ;;  %p1260_p13 = scmp.lt.s32.totalorder %s1485_s21, %s1258_s28 }
  0x43   : > { %p1255_p5 = pnand %p1253_p8, %p1241_p12  ;;  %p1261_p2 = scmp.lt.s32.totalorder %s1259_s29, %s1252_s13 }
  0x45   : > { %p1256_p9 = pneg %p1255_p5  ;;  %p1262_p10 = por %p1261_p2, %p1260_p13 }
  0x47   : > { %p1263_p11 = pnand %p1262_p10, %p1256_p9 }
  0x49   : > { %1266 = shalt.err (!%p1263_p11)
}
  0x4a   : > { %s1362_s30 = smov 512   ;;  %s1363_s7 = smov 32  }
  0x4b   : > { %1151 = dma.hbm_to_vmem [thread:$0]  (!%p1474_p6), %s1494_s4, 4096, %s1485_s21, %s1496_s5, %s1362_s30, %s1362_s30, %s1363_s7  }
  0x4c   : > { %p2693_p12 = scmp.ne.s32.totalorder %s2692_s26, 0 }
  0x4e   : > { %123 = sbr.rel (%p2693_p12) target bundleno = 246 (0xf6), region = 24 }
  0x53   : > { %s125_s8 = sand.u32 1, %s1349_s22   ;;  %p2694_p10 = scmp.ne.s32.totalorder %s2688_s6, 0 }
  0x54   : > { %s1124_s14 = sshll.u32 %s125_s8, 8  ;;  %s126_s16 = scalar_lea.sflag [#allocation6], %s125_s8 }
  0x55   : > { %s1520_s17 = scalar_lea.vmem [#allocation5], %s1124_s14 }
  0x56   : > { %1324 = dma.done.wait (%p2694_p10), %s126_s16, 4096  }
  0x57   : > { %1326 = vsyncadd (%p2694_p10), %s126_s16, 4294963200  ;;  %s1527_s18 = smul.u32 12, %s1426_s25  ;;  %v1364_v0 = vmov 1966171168   ;;  %v2672_v2 = vlaneseq  ;;  %v1566_v6 = vld [vmem:[%s1520_s17] sm:$0xff]  ;;  %v1575_v8 = vld [vmem:[%s1520_s17 + $0x8] sm:$0xff] }
  0x58   : > { %v345_v1 = vunpack.c.l.s4 %v1364_v0  ;;  %v1578_v9 = vld [vmem:[%s1520_s17 + $0x10] sm:$0xff]  ;;  %v1581_v10 = vld [vmem:[%s1520_s17 + $0x18] sm:$0xff]  ;;  %v1589_v11 = vld [vmem:[%s1520_s17 + $0x20] sm:$0xff] }
  0x59   : > { %s185_s15 = sadd.s32 1, %s1527_s18  ;;  %s1531_s21 = sld [smem:[#allocation3 + %s1527_s18]]  ;;  %v1569_v7 = vshrl.u32 %v2672_v2, 7  ;;  %v1592_v12 = vld [vmem:[%s1520_s17 + $0x28] sm:$0xff]  ;;  %v1613_v15 = vld [vmem:[%s1520_s17 + $0x30] sm:$0xff]  ;;  %v1616_v16 = vld [vmem:[%s1520_s17 + $0x38] sm:$0xff] }
  0x5a   : > { %s1533_s26 = sld [smem:[#allocation3 + %s185_s15]]  ;;  %s289_s6 = sadd.s32 4, %s1527_s18  ;;  %v346_v5 = vunpack.c.0.s8 %v345_v1  ;;  %v1635_v19 = vld [vmem:[%s1520_s17 + $0x40] sm:$0xff]  ;;  %v1638_v20 = vld [vmem:[%s1520_s17 + $0x48] sm:$0xff]  ;;  %v1650_v22 = vld [vmem:[%s1520_s17 + $0x50] sm:$0xff] }
  0x5b   : > { %s291_s4 = sadd.s32 5, %s1527_s18  ;;  %s1539_s5 = sld [smem:[#allocation3 + %s289_s6]]  ;;  %2695 = vst [vmem:[#allocation14_spill] sm:$0xff] %v1569_v7  ;;  %v1653_v23 = vld [vmem:[%s1520_s17 + $0x58] sm:$0xff]  ;;  %v1676_v29 = vld [vmem:[%s1520_s17 + $0x60] sm:$0xff]  ;;  %v1679_v30 = vld [vmem:[%s1520_s17 + $0x68] sm:$0xff] }
  0x5c   : > { %s373_s13 = sadd.s32 6, %s1527_s18  ;;  %s1550_s19 = sld [smem:[#allocation3 + %s291_s4]]  ;;  %v1606_v14 = vsub.s32 %v346_v5, %v1569_v7  ;;  %v1694_v35 = vld [vmem:[%s1520_s17 + $0x70] sm:$0xff]  ;;  %v1697_v36 = vld [vmem:[%s1520_s17 + $0x78] sm:$0xff]  ;;  %v1716_v40 = vld [vmem:[%s1520_s17 + $0x80] sm:$0xff] }
  0x5d   : > { %s375_s28 = sadd.s32 7, %s1527_s18  ;;  %s1555_s29 = sld [smem:[#allocation3 + %s373_s13]]  ;;  %v1719_v41 = vld [vmem:[%s1520_s17 + $0x88] sm:$0xff]  ;;  %v1736_v46 = vld [vmem:[%s1520_s17 + $0x90] sm:$0xff]  ;;  %v1739_v47 = vld [vmem:[%s1520_s17 + $0x98] sm:$0xff] }
  0x5e   : > { %s2668_s30 = sadd.s32 8, %s1527_s18  ;;  %s1562_s7 = sld [smem:[#allocation3 + %s375_s28]]  ;;  %v1762_v55 = vld [vmem:[%s1520_s17 + $0xa0] sm:$0xff]  ;;  %v1765_v56 = vld [vmem:[%s1520_s17 + $0xa8] sm:$0xff]  ;;  %v1782_v61 = vld [vmem:[%s1520_s17 + $0xb0] sm:$0xff] }
  0x5f   : > { %v1543_v3 = vstv %s1531_s21  ;;  %s2669_s8 = sadd.s32 9, %s1527_s18  ;;  %s2670_s14 = sadd.s32 10, %s1527_s18  ;;  %2710 = vst [vmem:[#allocation15_spill] sm:$0xff] %v1762_v55  ;;  %2711 = vst [vmem:[#allocation16_spill] sm:$0xff] %v1765_v56  ;;  %v1785_v62 = vld [vmem:[%s1520_s17 + $0xb8] sm:$0xff]  ;;  %v1819_v24 = vld [vmem:[%s1520_s17 + $0xc8] sm:$0xff] }
  0x60   : > { %v1546_v4 = vstv %s1533_s26  ;;  %vm188_vm0 = vcmp.le.s32.totalorder %v1543_v3, 0  ;;  %vm189_vm2 = vcmp.le.s32.totalorder %v1543_v3, 1  ;;  %s1585_s16 = sld [smem:[#allocation3 + %s2668_s30]]  ;;  %s2671_s15 = sadd.s32 11, %s1527_s18  ;;  %vm190_vm4 = vcmp.le.s32.totalorder %v1543_v3, 2  ;;  %2712 = vst [vmem:[#allocation17_spill] sm:$0xff] %v1782_v61 }
  0x61   : > { %vm197_vm1 = vcmp.gt.s32.totalorder %v1546_v4, 0  ;;  %vm198_vm3 = vcmp.gt.s32.totalorder %v1546_v4, 1  ;;  %vm191_vm5 = vcmp.le.s32.totalorder %v1543_v3, 3  ;;  %vm199_vm6 = vcmp.gt.s32.totalorder %v1546_v4, 2  ;;  %s1610_s30 = sld [smem:[#allocation3 + %s2669_s8]]  ;;  %p328_p2 = scmp.le.s32.totalorder %s1533_s26, %s1531_s21  ;;  %2713 = vst [vmem:[#allocation18_spill] sm:$0xff] %v1785_v62 }
  0x62   : > { %vm1601_vm7 = vmand %vm188_vm0, %vm197_vm1  ;;  %vm192_vm8 = vcmp.le.s32.totalorder %v1543_v3, 4  ;;  %vm193_vm9 = vcmp.le.s32.totalorder %v1543_v3, 5  ;;  %vm194_vm10 = vcmp.le.s32.totalorder %v1543_v3, 6  ;;  %v293_v18 = vstv %s1539_s5  ;;  %s1632_s8 = sld [smem:[#allocation3 + %s2670_s14]]  ;;  %p329_p5 = scmp.le.s32.totalorder %s1550_s19, %s1539_s5  ;;  %2722 = vst [vmem:[#allocation20_spill] sm:$0xff] %v1819_v24 }
  0x63   : > { %vm1625_vm11 = vmand %vm189_vm2, %vm198_vm3  ;;  %vm195_vm12 = vcmp.le.s32.totalorder %v1543_v3, 7  ;;  %vm200_vm13 = vcmp.gt.s32.totalorder %v1546_v4, 3  ;;  %vm201_vm14 = vcmp.gt.s32.totalorder %v1546_v4, 4  ;;  %vm202_vm15 = vcmp.gt.s32.totalorder %v1546_v4, 5  ;;  %s1647_s14 = sld [smem:[#allocation3 + %s2671_s15]]  ;;  %s615_s15 = sadd.s32 3, %s1527_s18 }
  0x64   : > { %v295_v21 = vstv %s1550_s19  ;;  %vm1659_vm0 = vmand %vm190_vm4, %vm199_vm6  ;;  %v229_v25 = vsel %vm1601_vm7, %v1566_v6, -inf  ;;  %v230_v26 = vsel %vm1601_vm7, %v1575_v8, -inf  ;;  %v231_v27 = vsel %vm1601_vm7, %v1578_v9, -inf  ;;  %p412_p6 = scmp.le.s32.totalorder %s1562_s7, %s1555_s29  ;;  %p1801_p1 = por %p329_p5, %p328_p2 }
  0x65   : > { %v232_v28 = vsel %vm1601_vm7, %v1581_v10, -inf  ;;  %v233_v31 = vsel %vm1625_vm11, %v1589_v11, -inf  ;;  %v234_v32 = vsel %vm1625_vm11, %v1592_v12, -inf  ;;  %v235_v33 = vsel %vm1625_vm11, %v1613_v15, -inf  ;;  %vm1705_vm3 = vmand %vm191_vm5, %vm200_vm13  ;;  %s2104_s19 = sld [smem:[#allocation3 + %s615_s15]] }
  0x66   : > { %v236_v34 = vsel %vm1625_vm11, %v1616_v16, -inf  ;;  %vm203_vm1 = vcmp.gt.s32.totalorder %v1546_v4, 6  ;;  %vm204_vm2 = vcmp.gt.s32.totalorder %v1546_v4, 7  ;;  %v377_v38 = vstv %s1555_s29  ;;  %vm1745_vm4 = vmand %vm192_vm8, %vm201_vm14  ;;  %p1839_p3 = por %p412_p6, %p328_p2  ;;  %s2119_s29 = sld [smem:[#allocation3 + %s289_s6]] }
  0x67   : > { %v379_v39 = vstv %s1562_s7  ;;  %v237_v42 = vsel %vm1659_vm0, %v1635_v19, -inf  ;;  %v238_v43 = vsel %vm1659_vm0, %v1638_v20, -inf  ;;  %v239_v44 = vsel %vm1659_vm0, %v1650_v22, -inf  ;;  %p492_p11 = scmp.le.s32.totalorder %s1610_s30, %s1585_s16  ;;  %vm1791_vm7 = vmand %vm193_vm9, %vm202_vm15  ;;  %s2148_s6 = sld [smem:[#allocation3 + %s373_s13]] }
  0x68   : > { %v240_v45 = vsel %vm1659_vm0, %v1653_v23, -inf  ;;  %v261_v49 = vmax.f32 %v229_v25, %v233_v31  ;;  %v268_v50 = vmax.f32 %v230_v26, %v234_v32  ;;  %v275_v51 = vmax.f32 %v231_v27, %v235_v33  ;;  %v1844_v31 = vld [vmem:[%s1520_s17 + $0xd0] sm:$0xff]  ;;  %v1847_v32 = vld [vmem:[%s1520_s17 + $0xd8] sm:$0xff]  ;;  %vm1853_vm11 = vmand %vm194_vm10, %vm203_vm1  ;;  %s331_s21 = scalar_select %p1801_p1, 1, 0 }
  0x69   : > { %v282_v52 = vmax.f32 %v232_v28, %v236_v34  ;;  %vm1750_vm5 = vcmp.ge.s32.totalorder %v1569_v7, %v293_v18  ;;  %vm1755_vm6 = vcmp.lt.s32.totalorder %v1569_v7, %v295_v21  ;;  %v241_v57 = vsel %vm1705_vm3, %v1676_v29, -inf  ;;  %p572_p0 = scmp.le.s32.totalorder %s1647_s14, %s1632_s8  ;;  %v1816_v21 = vld [vmem:[%s1520_s17 + $0xc0] sm:$0xff]  ;;  %2724 = vst [vmem:[#allocation21_spill] sm:$0xff] %v1844_v31  ;;  %2725 = vst [vmem:[#allocation22_spill] sm:$0xff] %v1847_v32  ;;  %p1863_p4 = por %p492_p11, %p328_p2 }
  0x6a   : > { %v242_v58 = vsel %vm1705_vm3, %v1679_v30, -inf  ;;  %v243_v59 = vsel %vm1705_vm3, %v1694_v35, -inf  ;;  %v244_v60 = vsel %vm1705_vm3, %v1697_v36, -inf  ;;  %v262_v0 = vmax.f32 %v261_v49, %v237_v42  ;;  %2721 = vst [vmem:[#allocation19_spill] sm:$0xff] %v1816_v21  ;;  %v1868_v42 = vld [vmem:[%s1520_s17 + $0xe0] sm:$0xff]  ;;  %vm1905_vm10 = vmand %vm195_vm12, %vm204_vm2  ;;  %s2757_s13 = sadd.s32 8, %s1527_s18 }
  0x6b   : > { %v269_v1 = vmax.f32 %v268_v50, %v238_v43  ;;  %v276_v5 = vmax.f32 %v275_v51, %v239_v44  ;;  %v283_v13 = vmax.f32 %v282_v52, %v240_v45  ;;  %vm1806_vm8 = vcmp.ge.s32.totalorder %v1569_v7, %v377_v38  ;;  %2729 = vst [vmem:[#allocation23_spill] sm:$0xff] %v1868_v42  ;;  %v1871_v43 = vld [vmem:[%s1520_s17 + $0xe8] sm:$0xff]  ;;  %p1891_p7 = por %p572_p0, %p328_p2  ;;  %v1896_v50 = vld [vmem:[%s1520_s17 + $0xf0] sm:$0xff]  ;;  %v1899_v51 = vld [vmem:[%s1520_s17 + $0xf8] sm:$0xff]  ;;  %p2817_p1 = scmp.ne.s32.totalorder %s2689_s11, 0 }
  0x6c   : > { %vm1811_vm9 = vcmp.lt.s32.totalorder %v1569_v7, %v379_v39  ;;  %v245_v25 = vsel %vm1745_vm4, %v1716_v40, -inf  ;;  %v246_v26 = vsel %vm1745_vm4, %v1719_v41, -inf  ;;  %v247_v27 = vsel %vm1745_vm4, %v1736_v46, -inf  ;;  %2730 = vst [vmem:[#allocation24_spill] sm:$0xff] %v1871_v43  ;;  %2732 = vst [vmem:[#allocation25_spill] sm:$0xff] %v1896_v50 }
  0x6d   : > { %v248_v28 = vsel %vm1745_vm4, %v1739_v47, -inf  ;;  %v263_v34 = vmax.f32 %v262_v0, %v241_v57  ;;  %v270_v37 = vmax.f32 %v269_v1, %v242_v58  ;;  %v277_v38 = vmax.f32 %v276_v5, %v243_v59  ;;  %2733 = vst [vmem:[#allocation26_spill] sm:$0xff] %v1899_v51  ;;  %s414_s17 = scalar_select %p1839_p3, 1, 0  ;;  %vm1945_vm12 = vmand %vm1750_vm5, %vm1755_vm6 }
  0x6e   : > { %v284_v39 = vmax.f32 %v283_v13, %v244_v60  ;;  %v249_v44 = vsel %vm1791_vm7, %v1762_v55, -inf  ;;  %v250_v45 = vsel %vm1791_vm7, %v1765_v56, -inf  ;;  %v251_v48 = vsel %vm1791_vm7, %v1782_v61, -inf  ;;  %s494_s26 = scalar_select %p1863_p4, 1, 0  ;;  %vm1967_vm13 = vmand %vm1806_vm8, %vm1811_vm9 }
  0x6f   : > { %v252_v49 = vsel %vm1791_vm7, %v1785_v62, -inf  ;;  %v264_v57 = vmax.f32 %v263_v34, %v245_v25  ;;  %v271_v58 = vmax.f32 %v270_v37, %v246_v26  ;;  %v278_v59 = vmax.f32 %v277_v38, %v247_v27  ;;  %s574_s7 = scalar_select %p1891_p7, 1, 0 }
  0x70   : > { %v285_v60 = vmax.f32 %v284_v39, %v248_v28  ;;  %v253_v63 = vsel %vm1853_vm11, %v1816_v21, -inf  ;;  %v254_v3 = vsel %vm1853_vm11, %v1819_v24, -inf  ;;  %v255_v4 = vsel %vm1853_vm11, %v1844_v31, -inf }
  0x71   : > { %v256_v0 = vsel %vm1853_vm11, %v1847_v32, -inf  ;;  %v265_v1 = vmax.f32 %v264_v57, %v249_v44  ;;  %v272_v5 = vmax.f32 %v271_v58, %v250_v45  ;;  %v279_v13 = vmax.f32 %v278_v59, %v251_v48 }
  0x72   : > { %v286_v25 = vmax.f32 %v285_v60, %v252_v49  ;;  %v257_v26 = vsel %vm1905_vm10, %v1868_v42, -inf  ;;  %v258_v27 = vsel %vm1905_vm10, %v1871_v43, -inf  ;;  %v259_v28 = vsel %vm1905_vm10, %v1896_v50, -inf }
  0x73   : > { %v260_v33 = vsel %vm1905_vm10, %v1899_v51, -inf  ;;  %v266_v34 = vmax.f32 %v265_v1, %v253_v63  ;;  %v273_v37 = vmax.f32 %v272_v5, %v254_v3  ;;  %v280_v38 = vmax.f32 %v279_v13, %v255_v4 }
  0x74   : > { %v287_v39 = vmax.f32 %v286_v25, %v256_v0  ;;  %v1949_v45 = vstv %s331_s21  ;;  %v1951_v48 = vstv %s414_s17  ;;  %v457_v49 = vstv %s1585_s16  ;;  %s2129_s21 = sld [smem:[#allocation3 + %s291_s4]]  ;;  %s2760_s17 = sadd.s32 9, %s1527_s18 }
  0x75   : > { %v459_v52 = vstv %s1610_s30  ;;  %v1955_v57 = vmax.f32 %v266_v34, %v257_v26  ;;  %v1957_v58 = vmax.f32 %v273_v37, %v258_v27  ;;  %v1959_v59 = vmax.f32 %v280_v38, %v259_v28  ;;  %s145_s30 = sand.u32 1, %s1337_s1   ;;  %s2157_s4 = sld [smem:[#allocation3 + %s375_s28]] }
  0x76   : > { %v1961_v60 = vmax.f32 %v287_v39, %v260_v33  ;;  %v1971_v54 = vstv %s494_s26  ;;  %v537_v63 = vstv %s1632_s8  ;;  %v539_v3 = vstv %s1647_s14  ;;  %s1125_s8 = sshll.u32 %s145_s30, 5  ;;  %s613_s14 = sadd.s32 2, %s1527_s18 }
  0x77   : > { %v1975_v4 = vstv %s574_s7  ;;  %v300_v0 = vsel %vm1945_vm12, %v1955_v57, -inf  ;;  %v301_v18 = vsel %vm1945_vm12, %v1957_v58, -inf  ;;  %v302_v17 = vsel %vm1945_vm12, %v1959_v59, -inf  ;;  %s2088_s16 = scalar_lea.vmem [#allocation8], %s1125_s8  ;;  %s2102_s5 = sld [smem:[#allocation3 + %s613_s14]] }
  0x78   : > { %v303_v1 = vsel %vm1945_vm12, %v1961_v60, -inf  ;;  %v304_v5 = vrot.slane %v300_v0, 4  ;;  %v310_v13 = vrot.slane %v301_v18, 4  ;;  %v316_v25 = vrot.slane %v302_v17, 4  ;;  %s2175_s28 = sld [smem:[#allocation3 + %s2757_s13]]  ;;  %s2763_s7 = sadd.s32 10, %s1527_s18 }
  0x79   : > { %v322_v26 = vrot.slane %v303_v1, 4  ;;  %vm1990_vm14 = vcmp.ge.s32.totalorder %v1569_v7, %v457_v49  ;;  %vm1995_vm15 = vcmp.lt.s32.totalorder %v1569_v7, %v459_v52  ;;  %vm333_vm0 = vcmp.eq.s32.totalorder %v1949_v45, 1  ;;  %s2191_s26 = sld [smem:[#allocation3 + %s2760_s17]]  ;;  %s2766_s14 = sadd.s32 11, %s1527_s18 }
  0x7a   : > { %v384_v33 = vsel %vm1967_vm13, %v1955_v57, -inf  ;;  %v385_v34 = vsel %vm1967_vm13, %v1957_v58, -inf  ;;  %v386_v37 = vsel %vm1967_vm13, %v1959_v59, -inf  ;;  %v387_v38 = vsel %vm1967_vm13, %v1961_v60, -inf  ;;  %vm2032_vm5 = vmand %vm1990_vm14, %vm1995_vm15  ;;  %s2207_s8 = sld [smem:[#allocation3 + %s2763_s7]]  ;;  %p757_p9 = scmp.le.s32.totalorder %s2129_s21, %s2119_s29 }
  0x7b   : > { %v305_v39 = vmax.f32 %v300_v0, %v304_v5  ;;  %v311_v44 = vmax.f32 %v301_v18, %v310_v13  ;;  %v317_v49 = vmax.f32 %v302_v17, %v316_v25  ;;  %v323_v52 = vmax.f32 %v303_v1, %v322_v26  ;;  %s2231_s15 = sld [smem:[#allocation3 + %s2766_s14]]  ;;  %p835_p13 = scmp.le.s32.totalorder %s2157_s4, %s2148_s6 }
  0x7c   : > { %v388_v2 = vrot.slane %v384_v33, 4  ;;  %v394_v51 = vrot.slane %v385_v34, 4  ;;  %v400_v50 = vrot.slane %v386_v37, 4  ;;  %v406_v43 = vrot.slane %v387_v38, 4 }
  0x7d   : > { %v306_v42 = vrot.slane %v305_v39, 2  ;;  %v312_v32 = vrot.slane %v311_v44, 2  ;;  %v318_v31 = vrot.slane %v317_v49, 2  ;;  %v324_v24 = vrot.slane %v323_v52, 2  ;;  %p756_p8 = scmp.le.s32.totalorder %s2104_s19, %s2102_s5 }
  0x7e   : > { %vm416_vm1 = vcmp.eq.s32.totalorder %v1951_v48, 1  ;;  %v389_v21 = vmax.f32 %v384_v33, %v388_v2  ;;  %v395_v62 = vmax.f32 %v385_v34, %v394_v51  ;;  %v401_v61 = vmax.f32 %v386_v37, %v400_v50 }
  0x7f   : > { %v407_v56 = vmax.f32 %v387_v38, %v406_v43  ;;  %vm2014_vm2 = vcmp.ge.s32.totalorder %v1569_v7, %v537_v63  ;;  %vm2019_vm3 = vcmp.lt.s32.totalorder %v1569_v7, %v539_v3  ;;  %v307_v18 = vmax.f32 %v305_v39, %v306_v42  ;;  %p913_p12 = scmp.le.s32.totalorder %s2191_s26, %s2175_s28  ;;  %p2331_p2 = por %p757_p9, %p756_p8 }
  0x80   : > { %v313_v17 = vmax.f32 %v311_v44, %v312_v32  ;;  %v319_v1 = vmax.f32 %v317_v49, %v318_v31  ;;  %v325_v5 = vmax.f32 %v323_v52, %v324_v24  ;;  %v390_v13 = vrot.slane %v389_v21, 2  ;;  %vm2070_vm6 = vmand %vm2014_vm2, %vm2019_vm3  ;;  %p2353_p5 = por %p835_p13, %p756_p8 }
  0x81   : > { %v396_v25 = vrot.slane %v395_v62, 2  ;;  %v402_v2 = vrot.slane %v401_v61, 2  ;;  %v408_v51 = vrot.slane %v407_v56, 2  ;;  %v308_v50 = vrot.slane %v307_v18, 1  ;;  %p991_p10 = scmp.le.s32.totalorder %s2231_s15, %s2207_s8  ;;  %p2371_p6 = por %p913_p12, %p756_p8 }
  0x82   : > { %v314_v43 = vrot.slane %v313_v17, 1  ;;  %v320_v26 = vrot.slane %v319_v1, 1  ;;  %v326_v63 = vrot.slane %v325_v5, 1  ;;  %v391_v33 = vmax.f32 %v389_v21, %v390_v13  ;;  %s759_s14 = scalar_select %p2331_p2, 1, 0 }
  0x83   : > { %v397_v34 = vmax.f32 %v395_v62, %v396_v25  ;;  %v403_v37 = vmax.f32 %v401_v61, %v402_v2  ;;  %v409_v3 = vmax.f32 %v407_v56, %v408_v51  ;;  %v309_v38 = vmax.f32 %v307_v18, %v308_v50  ;;  %p2389_p11 = por %p991_p10, %p756_p8 }
  0x84   : > { %v315_v7 = vmax.f32 %v313_v17, %v314_v43  ;;  %v321_v55 = vmax.f32 %v319_v1, %v320_v26  ;;  %v327_v42 = vmax.f32 %v325_v5, %v326_v63  ;;  %v2748_v32 = vlaneseq }
  0x85   : > { %v392_v31 = vrot.slane %v391_v33, 1  ;;  %v398_v39 = vrot.slane %v397_v34, 1  ;;  %v404_v44 = vrot.slane %v403_v37, 1  ;;  %v410_v49 = vrot.slane %v409_v3, 1 }
  0x86   : > { %vm2024_vm4 = vcmp.lt.s32.totalorder %v2748_v32, 512  ;;  %v334_v61 = vsel %vm333_vm0, 0.0, %v309_v38  ;;  %v335_v62 = vsel %vm333_vm0, 0.0, %v315_v7  ;;  %v336_v21 = vsel %vm333_vm0, 0.0, %v321_v55 }
  0x87   : > { %v337_v52 = vsel %vm333_vm0, 0.0, %v327_v42  ;;  %v342_v28 = vcombine.low %v334_v61, %v335_v62  ;;  %v393_v27 = vmax.f32 %v391_v33, %v392_v31  ;;  %v399_v17 = vmax.f32 %v397_v34, %v398_v39 }
  0x88   : > { %v343_v18 = vcombine.low %v336_v21, %v337_v52  ;;  %v405_v1 = vmax.f32 %v403_v37, %v404_v44  ;;  %v411_v5 = vmax.f32 %v409_v3, %v410_v49  ;;  %v464_v13 = vsel %vm2032_vm5, %v1955_v57, -inf }
  0x89   : > { %v465_v7 = vsel %vm2032_vm5, %v1957_v58, -inf  ;;  %v350_v55 = vrot.slane %v342_v28, %v1606_v14  ;;  %v417_v25 = vsel %vm416_vm1, 0.0, %v393_v27  ;;  %v418_v2 = vsel %vm416_vm1, 0.0, %v399_v17 }
  0x8a   : > { %v357_v45 = vrot.slane %v343_v18, %v1606_v14  ;;  %v419_v51 = vsel %vm416_vm1, 0.0, %v405_v1  ;;  %v420_v50 = vsel %vm416_vm1, 0.0, %v411_v5  ;;  %v425_v43 = vcombine.low %v417_v25, %v418_v2 }
  0x8b   : > { %v466_v26 = vsel %vm2032_vm5, %v1959_v59, -inf  ;;  %v426_v34 = vcombine.low %v419_v51, %v420_v50  ;;  %v467_v48 = vsel %vm2032_vm5, %v1961_v60, -inf  ;;  %v468_v37 = vrot.slane %v464_v13, 4 }
  0x8c   : > { %v358_v33 = vcombine.low %v350_v55, %v357_v45  ;;  %v433_v3 = vrot.slane %v425_v43, %v1606_v14  ;;  %v474_v38 = vrot.slane %v465_v7, 4  ;;  %v480_v42 = vrot.slane %v466_v26, 4 }
  0x8d   : > { %v486_v32 = vrot.slane %v467_v48, 4  ;;  %vm496_vm7 = vcmp.eq.s32.totalorder %v1971_v54, 1  ;;  %v440_v0 = vrot.slane %v426_v34, %v1606_v14  ;;  %v469_v31 = vmax.f32 %v464_v13, %v468_v37 }
  0x8e   : > { %v365_v53 = vrot.slane %v358_v33, %v1606_v14  ;;  %v544_v39 = vsel %vm2070_vm6, %v1955_v57, -inf  ;;  %v475_v44 = vmax.f32 %v465_v7, %v474_v38  ;;  %v481_v49 = vmax.f32 %v466_v26, %v480_v42 }
  0x8f   : > { %v487_v56 = vmax.f32 %v467_v48, %v486_v32  ;;  %v545_v61 = vsel %vm2070_vm6, %v1957_v58, -inf  ;;  %v441_v62 = vcombine.low %v433_v3, %v440_v0  ;;  %v470_v21 = vrot.slane %v469_v31, 2 }
  0x90   : > { %371 = vst.msk [vmem:[%s2088_s16] ss:$8 sm:$0xf] %vm2024_vm4, %v365_v53  ;;  %v546_v57 = vsel %vm2070_vm6, %v1959_v59, -inf  ;;  %v547_v52 = vsel %vm2070_vm6, %v1961_v60, -inf  ;;  %v476_v58 = vrot.slane %v475_v44, 2 }
  0x91   : > { %v482_v28 = vrot.slane %v481_v49, 2  ;;  %v488_v18 = vrot.slane %v487_v56, 2  ;;  %v548_v27 = vrot.slane %v544_v39, 4  ;;  %v448_v17 = vrot.slane %v441_v62, %v1606_v14 }
  0x92   : > { %v471_v1 = vmax.f32 %v469_v31, %v470_v21  ;;  %v554_v5 = vrot.slane %v545_v61, 4  ;;  %v560_v13 = vrot.slane %v546_v57, 4  ;;  %vm576_vm8 = vcmp.eq.s32.totalorder %v1975_v4, 1 }
  0x93   : > { %v477_v59 = vmax.f32 %v475_v44, %v476_v58  ;;  %v483_v7 = vmax.f32 %v481_v49, %v482_v28  ;;  %v489_v55 = vmax.f32 %v487_v56, %v488_v18  ;;  %v549_v45 = vmax.f32 %v544_v39, %v548_v27  ;;  %1126 = vst.msk [vmem:[%s2088_s16 + $0x1] ss:$8 sm:$0xf] %vm2024_vm4, %v448_v17 }
  0x94   : > { %v472_v60 = vrot.slane %v471_v1, 1  ;;  %v555_v25 = vmax.f32 %v545_v61, %v554_v5  ;;  %v561_v2 = vmax.f32 %v546_v57, %v560_v13  ;;  %v566_v51 = vrot.slane %v547_v52, 4 }
  0x95   : > { %v478_v50 = vrot.slane %v477_v59, 1  ;;  %v484_v43 = vrot.slane %v483_v7, 1  ;;  %v490_v26 = vrot.slane %v489_v55, 1  ;;  %v550_v63 = vrot.slane %v549_v45, 2 }
  0x96   : > { %v473_v33 = vmax.f32 %v471_v1, %v472_v60  ;;  %v556_v34 = vrot.slane %v555_v25, 2  ;;  %v562_v48 = vrot.slane %v561_v2, 2  ;;  %v567_v37 = vmax.f32 %v547_v52, %v566_v51 }
  0x97   : > { %v479_v3 = vmax.f32 %v477_v59, %v478_v50  ;;  %v485_v38 = vmax.f32 %v483_v7, %v484_v43  ;;  %v491_v42 = vmax.f32 %v489_v55, %v490_v26  ;;  %v551_v32 = vmax.f32 %v549_v45, %v550_v63 }
  0x98   : > { %v497_v53 = vsel %vm496_vm7, 0.0, %v473_v33  ;;  %v557_v0 = vmax.f32 %v555_v25, %v556_v34  ;;  %v563_v31 = vmax.f32 %v561_v2, %v562_v48  ;;  %v568_v39 = vrot.slane %v567_v37, 2 }
  0x99   : > { %v498_v44 = vsel %vm496_vm7, 0.0, %v479_v3  ;;  %v499_v49 = vsel %vm496_vm7, 0.0, %v485_v38  ;;  %v500_v56 = vsel %vm496_vm7, 0.0, %v491_v42  ;;  %v552_v61 = vrot.slane %v551_v32, 1 }
  0x9a   : > { %v505_v62 = vcombine.low %v497_v53, %v498_v44  ;;  %v506_v21 = vcombine.low %v499_v49, %v500_v56  ;;  %v558_v57 = vrot.slane %v557_v0, 1  ;;  %v564_v52 = vrot.slane %v563_v31, 1 }
  0x9b   : > { %v553_v58 = vmax.f32 %v551_v32, %v552_v61  ;;  %v569_v28 = vmax.f32 %v567_v37, %v568_v39  ;;  %v2122_v18 = vstv %s2102_s5  ;;  %v2125_v27 = vstv %s2104_s19  ;;  %v2773_v61 = vld [vmem:[#allocation15_spill] sm:$0xff]  ;;  %s837_s5 = scalar_select %p2353_p5, 1, 0 }
  0x9c   : > { %v513_v54 = vrot.slane %v505_v62, %v1606_v14  ;;  %v520_v17 = vrot.slane %v506_v21, %v1606_v14  ;;  %v559_v1 = vmax.f32 %v557_v0, %v558_v57  ;;  %v565_v5 = vmax.f32 %v563_v31, %v564_v52  ;;  %v2774_v21 = vld [vmem:[#allocation16_spill] sm:$0xff]  ;;  %s915_s19 = scalar_select %p2371_p6, 1, 0 }
  0x9d   : > { %v570_v13 = vrot.slane %v569_v28, 1  ;;  %v577_v59 = vsel %vm576_vm8, 0.0, %v553_v58  ;;  %vm618_vm9 = vcmp.le.s32.totalorder %v2122_v18, 0  ;;  %vm619_vm11 = vcmp.le.s32.totalorder %v2122_v18, 1 }
  0x9e   : > { %v521_v7 = vcombine.low %v513_v54, %v520_v17  ;;  %v578_v55 = vsel %vm576_vm8, 0.0, %v559_v1  ;;  %v579_v60 = vsel %vm576_vm8, 0.0, %v565_v5  ;;  %vm627_vm10 = vcmp.gt.s32.totalorder %v2125_v27, 0  ;;  %v2777_v17 = vld [vmem:[#allocation18_spill] sm:$0xff]  ;;  %v2778_v5 = vld [vmem:[#allocation19_spill] sm:$0xff] }
  0x9f   : > { %v571_v45 = vmax.f32 %v569_v28, %v570_v13  ;;  %v585_v25 = vcombine.low %v577_v59, %v578_v55  ;;  %vm620_vm12 = vcmp.le.s32.totalorder %v2122_v18, 2  ;;  %vm621_vm13 = vcmp.le.s32.totalorder %v2122_v18, 3  ;;  %vm2169_vm5 = vmand %vm618_vm9, %vm627_vm10  ;;  %v2779_v59 = vld [vmem:[#allocation20_spill] sm:$0xff] }
  0xa0   : > { %v528_v2 = vrot.slane %v521_v7, %v1606_v14  ;;  %vm628_vm14 = vcmp.gt.s32.totalorder %v2125_v27, 1  ;;  %vm622_vm15 = vcmp.le.s32.totalorder %v2122_v18, 4  ;;  %vm623_vm0 = vcmp.le.s32.totalorder %v2122_v18, 5 }
  0xa1   : > { %v580_v51 = vsel %vm576_vm8, 0.0, %v571_v45  ;;  %vm629_vm1 = vcmp.gt.s32.totalorder %v2125_v27, 2  ;;  %v593_v43 = vrot.slane %v585_v25, %v1606_v14  ;;  %vm624_vm2 = vcmp.le.s32.totalorder %v2122_v18, 6  ;;  %vm2183_vm8 = vmand %vm619_vm11, %vm628_vm14 }
  0xa2   : > { %1127 = vst.msk [vmem:[%s2088_s16 + $0x2] ss:$8 sm:$0xf] %vm2024_vm4, %v528_v2  ;;  %v586_v50 = vcombine.low %v579_v60, %v580_v51  ;;  %vm630_vm3 = vcmp.gt.s32.totalorder %v2125_v27, 3  ;;  %vm631_vm7 = vcmp.gt.s32.totalorder %v2125_v27, 4  ;;  %v721_v63 = vstv %s2119_s29  ;;  %vm2201_vm11 = vmand %vm620_vm12, %vm629_vm1  ;;  %v2786_v51 = vld [vmem:[#allocation22_spill] sm:$0xff] }
  0xa3   : > { %v723_v33 = vstv %s2129_s21  ;;  %vm632_vm9 = vcmp.gt.s32.totalorder %v2125_v27, 5  ;;  %vm633_vm10 = vcmp.gt.s32.totalorder %v2125_v27, 6  ;;  %vm634_vm6 = vcmp.gt.s32.totalorder %v2125_v27, 7  ;;  %vm2213_vm14 = vmand %vm621_vm13, %vm630_vm3  ;;  %v2785_v27 = vld [vmem:[#allocation21_spill] sm:$0xff]  ;;  %s993_s29 = scalar_select %p2389_p11, 1, 0 }
  0xa4   : > { %v600_v34 = vrot.slane %v586_v50, %v1606_v14  ;;  %v659_v3 = vsel %vm2169_vm5, %v1566_v6, -inf  ;;  %v660_v38 = vsel %vm2169_vm5, %v1575_v8, -inf  ;;  %v661_v42 = vsel %vm2169_vm5, %v1578_v9, -inf  ;;  %vm2237_vm12 = vmand %vm622_vm15, %vm631_vm7  ;;  %s1139_s21 = sshll.u32 %s1426_s25, 9  ;;  %s1365_s25 = smov [#allocation8]  }
  0xa5   : > { %v662_v32 = vsel %vm2169_vm5, %v1581_v10, -inf  ;;  %v663_v9 = vsel %vm2183_vm8, %v1589_v11, -inf  ;;  %v664_v10 = vsel %vm2183_vm8, %v1592_v12, -inf  ;;  %v665_v53 = vsel %vm2183_vm8, %v1613_v15, -inf  ;;  %vm2267_vm13 = vmand %vm623_vm0, %vm632_vm9  ;;  %s1271_s18 = sshll.u32 %s1365_s25, 4  ;;  %s1272_s18 = int_to_ptr.vmem [resolvable:$false] %s1271_s18 }
  0xa6   : > { %v601_v6 = vcombine.low %v593_v43, %v600_v34  ;;  %v666_v0 = vsel %vm2183_vm8, %v1616_v16, -inf  ;;  %v667_v31 = vsel %vm2201_vm11, %v1635_v19, -inf  ;;  %v668_v11 = vsel %vm2201_vm11, %v1638_v20, -inf  ;;  %vm2305_vm15 = vmand %vm624_vm2, %vm633_vm10  ;;  %s1273_s13 = scalar_lea.vmem %s1272_s18, 1024 }
  0xa7   : > { %v669_v12 = vsel %vm2201_vm11, %v1650_v22, -inf  ;;  %v670_v19 = vsel %vm2201_vm11, %v1653_v23, -inf  ;;  %v671_v20 = vsel %vm2213_vm14, %v1676_v29, -inf  ;;  %v672_v22 = vsel %vm2213_vm14, %v1679_v30, -inf }
  0xa8   : > { %v608_v15 = vrot.slane %v601_v6, %v1606_v14  ;;  %v673_v39 = vsel %vm2213_vm14, %v1694_v35, -inf  ;;  %v674_v23 = vsel %vm2213_vm14, %v1697_v36, -inf  ;;  %v675_v29 = vsel %vm2237_vm12, %v1716_v40, -inf  ;;  %v2790_v6 = vld [vmem:[#allocation14_spill] sm:$0xff] }
  0xa9   : > { %v676_v30 = vsel %vm2237_vm12, %v1719_v41, -inf  ;;  %v691_v36 = vmax.f32 %v659_v3, %v663_v9  ;;  %v698_v40 = vmax.f32 %v660_v38, %v664_v10  ;;  %v705_v44 = vmax.f32 %v661_v42, %v665_v53  ;;  %v2788_v3 = vld [vmem:[#allocation23_spill] sm:$0xff]  ;;  %v2789_v42 = vld [vmem:[#allocation24_spill] sm:$0xff] }
  0xaa   : > { %1128 = vst.msk [vmem:[%s2088_s16 + $0x3] ss:$8 sm:$0xf] %vm2024_vm4, %v608_v15  ;;  %v712_v41 = vmax.f32 %v662_v32, %v666_v0  ;;  %v677_v49 = vsel %vm2237_vm12, %v1736_v46, -inf  ;;  %v678_v56 = vsel %vm2237_vm12, %v1739_v47, -inf  ;;  %v679_v62 = vsel %vm2267_vm13, %v2773_v61, -inf }
  0xab   : > { %v680_v57 = vsel %vm2267_vm13, %v2774_v21, -inf  ;;  %v692_v52 = vmax.f32 %v691_v36, %v667_v31  ;;  %v699_v58 = vmax.f32 %v698_v40, %v668_v11  ;;  %v706_v46 = vmax.f32 %v705_v44, %v669_v12  ;;  %v2776_v47 = vld [vmem:[#allocation17_spill] sm:$0xff]  ;;  %v2796_v12 = vld [vmem:[#allocation26_spill] sm:$0xff] }
  0xac   : > { %v713_v28 = vmax.f32 %v712_v41, %v670_v19  ;;  %v681_v54 = vsel %vm2267_vm13, %v2776_v47, -inf  ;;  %v682_v1 = vsel %vm2267_vm13, %v2777_v17, -inf  ;;  %v683_v13 = vsel %vm2305_vm15, %v2778_v5, -inf }
  0xad   : > { %v684_v7 = vsel %vm2305_vm15, %v2779_v59, -inf  ;;  %vm2781_vm0 = vcmp.le.s32.totalorder %v2122_v18, 7  ;;  %v693_v45 = vmax.f32 %v692_v52, %v671_v20  ;;  %v700_v60 = vmax.f32 %v699_v58, %v672_v22 }
  0xae   : > { %vm2361_vm1 = vmand %vm2781_vm0, %vm634_vm6  ;;  %v707_v25 = vmax.f32 %v706_v46, %v673_v39  ;;  %v714_v2 = vmax.f32 %v713_v28, %v674_v23  ;;  %v685_v18 = vsel %vm2305_vm15, %v2785_v27, -inf  ;;  %v686_v50 = vsel %vm2305_vm15, %v2786_v51, -inf }
  0xaf   : > { %v800_v43 = vstv %s2148_s6  ;;  %v802_v4 = vstv %s2157_s4  ;;  %v694_v26 = vmax.f32 %v693_v45, %v675_v29  ;;  %v701_v34 = vmax.f32 %v700_v60, %v676_v30  ;;  %s1047_s6 = sshll.u32 %s2088_s16, 4  ;;  %s1048_s6 = int_to_ptr.vmem [resolvable:$true] %s1047_s6 }
  0xb0   : > { %v708_v48 = vmax.f32 %v707_v25, %v677_v49  ;;  %v715_v37 = vmax.f32 %v714_v2, %v678_v56  ;;  %v687_v38 = vsel %vm2361_vm1, %v2788_v3, -inf  ;;  %v688_v32 = vsel %vm2361_vm1, %v2789_v42, -inf  ;;  %p1274_p7 = scmp.lt.s32.totalorder %s1048_s6, %s1272_s18 }
  0xb1   : > { %vm2404_vm2 = vcmp.ge.s32.totalorder %v2790_v6, %v721_v63  ;;  %vm2411_vm3 = vcmp.lt.s32.totalorder %v2790_v6, %v723_v33  ;;  %v695_v10 = vmax.f32 %v694_v26, %v679_v62  ;;  %v702_v53 = vmax.f32 %v701_v34, %v680_v57  ;;  %v2795_v63 = vld [vmem:[#allocation25_spill] sm:$0xff] }
  0xb2   : > { %v709_v0 = vmax.f32 %v708_v48, %v681_v54  ;;  %v716_v31 = vmax.f32 %v715_v37, %v682_v1  ;;  %v689_v11 = vsel %vm2361_vm1, %v2795_v63, -inf  ;;  %v690_v33 = vsel %vm2361_vm1, %v2796_v12, -inf  ;;  %vm2441_vm7 = vmand %vm2404_vm2, %vm2411_vm3 }
  0xb3   : > { %vm2426_vm5 = vcmp.ge.s32.totalorder %v2790_v6, %v800_v43  ;;  %vm2431_vm6 = vcmp.lt.s32.totalorder %v2790_v6, %v802_v4  ;;  %v696_v19 = vmax.f32 %v695_v10, %v683_v13  ;;  %v703_v20 = vmax.f32 %v702_v53, %v684_v7 }
  0xb4   : > { %v710_v22 = vmax.f32 %v709_v0, %v685_v18  ;;  %v717_v39 = vmax.f32 %v716_v31, %v686_v50  ;;  %v2445_v29 = vstv %s759_s14  ;;  %v2447_v30 = vstv %s837_s5  ;;  %vm2463_vm8 = vmand %vm2426_vm5, %vm2431_vm6 }
  0xb5   : > { %v878_v35 = vstv %s2175_s28  ;;  %v880_v36 = vstv %s2191_s26  ;;  %v2451_v40 = vmax.f32 %v696_v19, %v687_v38  ;;  %v2453_v44 = vmax.f32 %v703_v20, %v688_v32  ;;  %s1045_s26 = scalar_lea.hbm %s2664_s3, %s1139_s21 }
  0xb6   : > { %v2455_v41 = vmax.f32 %v710_v22, %v689_v11  ;;  %v2457_v49 = vmax.f32 %v717_v39, %v690_v33  ;;  %v2467_v61 = vstv %s915_s19  ;;  %v956_v62 = vstv %s2207_s8  ;;  %s1033_s8 = scalar_lea.sflag [#allocation7], %s145_s30 }
  0xb7   : > { %v958_v21 = vstv %s2231_s15  ;;  %v2471_v57 = vstv %s993_s29  ;;  %v728_v52 = vsel %vm2441_vm7, %v2451_v40, -inf  ;;  %v729_v58 = vsel %vm2441_vm7, %v2453_v44, -inf  ;;  %s1267_s15 = scalar_lea.vmem %s1048_s6, 512 }
  0xb8   : > { %v730_v46 = vsel %vm2441_vm7, %v2455_v41, -inf  ;;  %v731_v28 = vsel %vm2441_vm7, %v2457_v49, -inf  ;;  %v732_v47 = vrot.slane %v728_v52, 4  ;;  %v738_v54 = vrot.slane %v729_v58, 4  ;;  %p1268_p0 = scmp.ne.s32.totalorder %s1048_s6, %s1267_s15  ;;  %p1275_p8 = scmp.lt.s32.totalorder %s1273_s13, %s1267_s15 }
  0xb9   : > { %v744_v17 = vrot.slane %v730_v46, 4  ;;  %v750_v1 = vrot.slane %v731_v28, 4  ;;  %vm2486_vm9 = vcmp.ge.s32.totalorder %v2790_v6, %v878_v35  ;;  %vm2491_vm10 = vcmp.lt.s32.totalorder %v2790_v6, %v880_v36 }
  0xba   : > { %vm761_vm11 = vcmp.eq.s32.totalorder %v2445_v29, 1  ;;  %v807_v59 = vsel %vm2463_vm8, %v2451_v40, -inf  ;;  %v808_v7 = vsel %vm2463_vm8, %v2453_v44, -inf  ;;  %v809_v55 = vsel %vm2463_vm8, %v2455_v41, -inf  ;;  %vm2523_vm15 = vmand %vm2486_vm9, %vm2491_vm10  ;;  %p1269_p3 = pnand %p1268_p0, %p2817_p1  ;;  %p1276_p9 = por %p1275_p8, %p1274_p7 }
  0xbb   : > { %v810_v45 = vsel %vm2463_vm8, %v2457_v49, -inf  ;;  %v733_v60 = vmax.f32 %v728_v52, %v732_v47  ;;  %v739_v25 = vmax.f32 %v729_v58, %v738_v54  ;;  %v745_v2 = vmax.f32 %v730_v46, %v744_v17 }
  0xbc   : > { %v751_v27 = vmax.f32 %v731_v28, %v750_v1  ;;  %v811_v18 = vrot.slane %v807_v59, 4  ;;  %v817_v51 = vrot.slane %v808_v7, 4  ;;  %v823_v50 = vrot.slane %v809_v55, 4  ;;  %p1270_p4 = pneg %p1269_p3 }
  0xbd   : > { %v829_v43 = vrot.slane %v810_v45, 4  ;;  %v734_v4 = vrot.slane %v733_v60, 2  ;;  %v740_v26 = vrot.slane %v739_v25, 2  ;;  %v746_v34 = vrot.slane %v745_v2, 2 }
  0xbe   : > { %v752_v48 = vrot.slane %v751_v27, 2  ;;  %vm839_vm14 = vcmp.eq.s32.totalorder %v2447_v30, 1  ;;  %v812_v37 = vmax.f32 %v807_v59, %v811_v18  ;;  %v818_v3 = vmax.f32 %v808_v7, %v817_v51  ;;  %p1277_p13 = pnand %p1276_p9, %p1270_p4 }
  0xbf   : > { %v824_v38 = vmax.f32 %v809_v55, %v823_v50  ;;  %v830_v42 = vmax.f32 %v810_v45, %v829_v43  ;;  %vm2510_vm12 = vcmp.ge.s32.totalorder %v2790_v6, %v956_v62  ;;  %vm2515_vm13 = vcmp.lt.s32.totalorder %v2790_v6, %v958_v21 }
  0xc0   : > { %v735_v9 = vmax.f32 %v733_v60, %v734_v4  ;;  %v741_v10 = vmax.f32 %v739_v25, %v740_v26  ;;  %v747_v53 = vmax.f32 %v745_v2, %v746_v34  ;;  %v753_v0 = vmax.f32 %v751_v27, %v752_v48  ;;  %vm2558_vm0 = vmand %vm2510_vm12, %vm2515_vm13 }
  0xc1   : > { %v813_v31 = vrot.slane %v812_v37, 2  ;;  %v819_v63 = vrot.slane %v818_v3, 2  ;;  %v825_v11 = vrot.slane %v824_v38, 2  ;;  %v831_v12 = vrot.slane %v830_v42, 2 }
  0xc2   : > { %v736_v33 = vrot.slane %v735_v9, 1  ;;  %v742_v15 = vrot.slane %v741_v10, 1  ;;  %v748_v16 = vrot.slane %v747_v53, 1  ;;  %v754_v19 = vrot.slane %v753_v0, 1 }
  0xc3   : > { %v814_v20 = vmax.f32 %v812_v37, %v813_v31  ;;  %v820_v22 = vmax.f32 %v818_v3, %v819_v63  ;;  %v826_v39 = vmax.f32 %v824_v38, %v825_v11  ;;  %v832_v23 = vmax.f32 %v830_v42, %v831_v12 }
  0xc4   : > { %v737_v6 = vmax.f32 %v735_v9, %v736_v33  ;;  %v743_v35 = vmax.f32 %v741_v10, %v742_v15  ;;  %v749_v36 = vmax.f32 %v747_v53, %v748_v16  ;;  %v755_v56 = vmax.f32 %v753_v0, %v754_v19 }
  0xc5   : > { %v815_v62 = vrot.slane %v814_v20, 1  ;;  %v821_v21 = vrot.slane %v820_v22, 1  ;;  %v827_v52 = vrot.slane %v826_v39, 1  ;;  %v833_v58 = vrot.slane %v832_v23, 1 }
  0xc6   : > { %v762_v28 = vsel %vm761_vm11, 0.0, %v737_v6  ;;  %v763_v47 = vsel %vm761_vm11, 0.0, %v743_v35  ;;  %v764_v54 = vsel %vm761_vm11, 0.0, %v749_v36  ;;  %v765_v17 = vsel %vm761_vm11, 0.0, %v755_v56 }
  0xc7   : > { %v770_v1 = vcombine.low %v762_v28, %v763_v47  ;;  %v771_v13 = vcombine.low %v764_v54, %v765_v17  ;;  %v816_v59 = vmax.f32 %v814_v20, %v815_v62  ;;  %v822_v5 = vmax.f32 %v820_v22, %v821_v21 }
  0xc8   : > { %v828_v7 = vmax.f32 %v826_v39, %v827_v52  ;;  %v834_v55 = vmax.f32 %v832_v23, %v833_v58  ;;  %v885_v45 = vsel %vm2523_vm15, %v2451_v40, -inf  ;;  %v886_v60 = vsel %vm2523_vm15, %v2453_v44, -inf }
  0xc9   : > { %v778_v25 = vrot.slane %v770_v1, %v1606_v14  ;;  %v785_v2 = vrot.slane %v771_v13, %v1606_v14  ;;  %v840_v29 = vsel %vm839_vm14, 0.0, %v816_v59  ;;  %v841_v27 = vsel %vm839_vm14, 0.0, %v822_v5 }
  0xca   : > { %v842_v18 = vsel %vm839_vm14, 0.0, %v828_v7  ;;  %v843_v51 = vsel %vm839_vm14, 0.0, %v834_v55  ;;  %v848_v50 = vcombine.low %v840_v29, %v841_v27  ;;  %v887_v43 = vsel %vm2523_vm15, %v2455_v41, -inf }
  0xcb   : > { %v786_v26 = vcombine.low %v778_v25, %v785_v2  ;;  %v849_v34 = vcombine.low %v842_v18, %v843_v51  ;;  %v888_v30 = vsel %vm2523_vm15, %v2457_v49, -inf  ;;  %v889_v48 = vrot.slane %v885_v45, 4 }
  0xcc   : > { %v856_v37 = vrot.slane %v848_v50, %v1606_v14  ;;  %v895_v3 = vrot.slane %v886_v60, 4  ;;  %v901_v38 = vrot.slane %v887_v43, 4  ;;  %v907_v42 = vrot.slane %v888_v30, 4 }
  0xcd   : > { %vm917_vm1 = vcmp.eq.s32.totalorder %v2467_v61, 1  ;;  %v793_v32 = vrot.slane %v786_v26, %v1606_v14  ;;  %v863_v8 = vrot.slane %v849_v34, %v1606_v14  ;;  %v890_v9 = vmax.f32 %v885_v45, %v889_v48 }
  0xce   : > { %v963_v10 = vsel %vm2558_vm0, %v2451_v40, -inf  ;;  %v896_v53 = vmax.f32 %v886_v60, %v895_v3  ;;  %v902_v0 = vmax.f32 %v887_v43, %v901_v38  ;;  %v908_v31 = vmax.f32 %v888_v30, %v907_v42 }
  0xcf   : > { %v964_v63 = vsel %vm2558_vm0, %v2453_v44, -inf  ;;  %1129 = vst.msk [vmem:[%s2088_s16 + $0x4] ss:$8 sm:$0xf] %vm2024_vm4, %v793_v32  ;;  %v864_v11 = vcombine.low %v856_v37, %v863_v8  ;;  %v891_v12 = vrot.slane %v890_v9, 2  ;;  %v965_v33 = vsel %vm2558_vm0, %v2455_v41, -inf }
  0xd0   : > { %v966_v40 = vsel %vm2558_vm0, %v2457_v49, -inf  ;;  %v897_v15 = vrot.slane %v896_v53, 2  ;;  %v903_v16 = vrot.slane %v902_v0, 2  ;;  %v909_v19 = vrot.slane %v908_v31, 2 }
  0xd1   : > { %v967_v20 = vrot.slane %v963_v10, 4  ;;  %v871_v44 = vrot.slane %v864_v11, %v1606_v14  ;;  %v892_v22 = vmax.f32 %v890_v9, %v891_v12  ;;  %v973_v39 = vrot.slane %v964_v63, 4 }
  0xd2   : > { %v979_v23 = vrot.slane %v965_v33, 4  ;;  %vm995_vm2 = vcmp.eq.s32.totalorder %v2471_v57, 1  ;;  %v898_v6 = vmax.f32 %v896_v53, %v897_v15  ;;  %v904_v35 = vmax.f32 %v902_v0, %v903_v16 }
  0xd3   : > { %v910_v36 = vmax.f32 %v908_v31, %v909_v19  ;;  %v968_v56 = vmax.f32 %v963_v10, %v967_v20  ;;  %1130 = vst.msk [vmem:[%s2088_s16 + $0x5] ss:$8 sm:$0xf] %vm2024_vm4, %v871_v44  ;;  %v893_v41 = vrot.slane %v892_v22, 1  ;;  %v974_v49 = vmax.f32 %v964_v63, %v973_v39 }
  0xd4   : > { %v980_v62 = vmax.f32 %v965_v33, %v979_v23  ;;  %v985_v21 = vrot.slane %v966_v40, 4  ;;  %v899_v52 = vrot.slane %v898_v6, 1  ;;  %v905_v58 = vrot.slane %v904_v35, 1 }
  0xd5   : > { %v911_v46 = vrot.slane %v910_v36, 1  ;;  %v969_v28 = vrot.slane %v968_v56, 2  ;;  %v894_v47 = vmax.f32 %v892_v22, %v893_v41  ;;  %v975_v54 = vrot.slane %v974_v49, 2 }
  0xd6   : > { %v981_v17 = vrot.slane %v980_v62, 2  ;;  %v986_v1 = vmax.f32 %v966_v40, %v985_v21  ;;  %v900_v13 = vmax.f32 %v898_v6, %v899_v52  ;;  %v906_v59 = vmax.f32 %v904_v35, %v905_v58 }
  0xd7   : > { %v912_v5 = vmax.f32 %v910_v36, %v911_v46  ;;  %v970_v7 = vmax.f32 %v968_v56, %v969_v28  ;;  %v918_v55 = vsel %vm917_vm1, 0.0, %v894_v47  ;;  %v976_v45 = vmax.f32 %v974_v49, %v975_v54 }
  0xd8   : > { %v982_v60 = vmax.f32 %v980_v62, %v981_v17  ;;  %v987_v25 = vrot.slane %v986_v1, 2  ;;  %v919_v2 = vsel %vm917_vm1, 0.0, %v900_v13  ;;  %v920_v29 = vsel %vm917_vm1, 0.0, %v906_v59 }
  0xd9   : > { %v921_v27 = vsel %vm917_vm1, 0.0, %v912_v5  ;;  %v971_v18 = vrot.slane %v970_v7, 1  ;;  %v926_v51 = vcombine.low %v918_v55, %v919_v2  ;;  %v977_v43 = vrot.slane %v976_v45, 1 }
  0xda   : > { %v927_v50 = vcombine.low %v920_v29, %v921_v27  ;;  %v983_v4 = vrot.slane %v982_v60, 1  ;;  %v988_v34 = vmax.f32 %v986_v1, %v987_v25 }
  0xdb   : > { %v972_v26 = vmax.f32 %v970_v7, %v971_v18  ;;  %v934_v30 = vrot.slane %v926_v51, %v1606_v14  ;;  %v978_v37 = vmax.f32 %v976_v45, %v977_v43 }
  0xdc   : > { %v941_v48 = vrot.slane %v927_v50, %v1606_v14  ;;  %v984_v3 = vmax.f32 %v982_v60, %v983_v4  ;;  %v989_v38 = vrot.slane %v988_v34, 1 }
  0xdd   : > { %v996_v61 = vsel %vm995_vm2, 0.0, %v972_v26  ;;  %v997_v32 = vsel %vm995_vm2, 0.0, %v978_v37 }
  0xde   : > { %v942_v42 = vcombine.low %v934_v30, %v941_v48  ;;  %v990_v8 = vmax.f32 %v988_v34, %v989_v38  ;;  %v998_v9 = vsel %vm995_vm2, 0.0, %v984_v3  ;;  %v1004_v10 = vcombine.low %v996_v61, %v997_v32 }
  0xe0   : > { %v949_v53 = vrot.slane %v942_v42, %v1606_v14  ;;  %v999_v0 = vsel %vm995_vm2, 0.0, %v990_v8  ;;  %v1012_v63 = vrot.slane %v1004_v10, %v1606_v14 }
  0xe1   : > { %v1005_v31 = vcombine.low %v998_v9, %v999_v0 }
  0xe2   : > { %1131 = vst.msk [vmem:[%s2088_s16 + $0x6] ss:$8 sm:$0xf] %vm2024_vm4, %v949_v53 }
  0xe3   : > { %v1019_v11 = vrot.slane %v1005_v31, %v1606_v14 }
  0xe5   : > { %v1020_v12 = vcombine.low %v1012_v63, %v1019_v11 }
  0xe7   : > { %v1027_v33 = vrot.slane %v1020_v12, %v1606_v14 }
  0xe9   : > { %1132 = vst.msk [vmem:[%s2088_s16 + $0x7] ss:$8 sm:$0xf] %vm2024_vm4, %v1027_v33 }
  0xea   : > { %1280 = shalt.err (!%p1277_p13)
}
  0xeb   : > { %s1281_s17 = scalar_lea.hbm %s1045_s26, 512  ;;  %s1285_s7 = scalar_lea.hbm %s2664_s3, 1536 }
  0xec   : > { %p1282_p12 = scmp.ne.s32.totalorder %s1045_s26, %s1281_s17  ;;  %p1286_p5 = scmp.lt.s32.totalorder %s1045_s26, %s2664_s3 }
  0xed   : > { %p1287_p6 = scmp.lt.s32.totalorder %s1285_s7, %s1281_s17 }
  0xee   : > { %p1283_p10 = pnand %p1282_p12, %p2817_p1 }
  0xef   : > { %p1288_p11 = por %p1287_p6, %p1286_p5 }
  0xf0   : > { %p1284_p2 = pneg %p1283_p10 }
  0xf2   : > { %p1289_p0 = pnand %p1288_p11, %p1284_p2 }
  0xf4   : > { %1292 = shalt.err (!%p1289_p0)
}
  0xf5   : > { %1144 = dma.vmem_to_hbm [thread:$0]  (%p2817_p1), %s1048_s6, 512, %s1045_s26, %s1033_s8  }
  0xf6 PF: > { %p1157_p3 = scmp.ge.s32.totalorder %s1357_s24, 2  ;;  %s1059_s19 = sand.u32 1, %s1333_s0  }
  0xf7   : > { %p2818_p4 = scmp.ne.s32.totalorder %s2690_s12, 0  ;;  %s1060_s29 = scalar_lea.sflag [#allocation7], %s1059_s19 }
  0xf9   : > { %p1153_p7 = pnand %p1157_p3, %p2818_p4 }
  0xfb   : > { %p1154_p8 = pneg %p1153_p7 }
  0xfd   : > { %1328 = dma.done.wait (%p1154_p8), %s1060_s29, 512  }
  0xfe   : > { %1330 = vsyncadd (%p1154_p8), %s1060_s29, 4294966784  ;;  %p24_p1 = scmp.ge.s32.totalorder %s1430_s27, 5   ;;  %s2819_s0 = smov %s1337_s1 }
  0xff   : > { %s2820_s1 = smov %s1341_s20  ;;  %s2821_s20 = smov %s1457_s9 }
 0x100   : > { %s2822_s21 = smov %s1349_s22  ;;  %s2823_s22 = smov %s1353_s23 }
 0x101   : > { %s2824_s23 = smov %s1460_s10  ;;  %s2825_s24 = smov %s1430_s27 }
 0x102   :  { %26 = sbr.rel (!%p24_p1) target bundleno = 23 (0x17), region = 76 }
 0x107   :  { %1065 = vsyncpa [#allocation6], 1 }
 0x108   :  { %1067 = vsyncpa [#allocation6 + $0x1], 1 }
 0x109   :  { %1068 = vsyncpa [#allocation7], 1 }
 0x10a   :  { %1070 = vsyncpa [#allocation7 + $0x1], 1 }

</bundles_post_ra>
